<compile_context>
chip_gen: v6e
topology: v6e:2x2x1
jax: 0.10.0
libtpu: 0.0.40
codegen_flags: <defaults>
</compile_context>

<pallas_src>
import jax
import jax.numpy as jnp
from jax import lax
from jax.experimental import pallas as pl
from jax.experimental.pallas import tpu as pltpu

# ------------------------- problem sizes (small, consistent with module) -----
N_ITEM = 128           # module's n_item (scaled down)
N_NODES = 2 * N_ITEM   # cat([all_vision, all_text], 0)
EMB = 128              # module uses 512; scaled down, kept a multiple of 128
N_LAYERS = 3           # self.layers = [512, 512, 512]
TILE = 128             # row-block tile (use 256 on v6e/v7x at real scale)
LEAKY_SLOPE = 0.2
NORM_EPS = 1e-12       # F.normalize default eps


def ngcf_forward(items, all_vision, all_text, a_hat, params):
    """Builds packed kernel inputs, runs pallas_call, gathers `items`."""
    wgc, bgc, wgc2, bgc2, wbi, bbi = params

    assert all_vision.shape == all_text.shape
    ego0 = jnp.concatenate([all_vision, all_text], axis=0)     # (N, D) f32
    n, d = ego0.shape
    n_item = all_vision.shape[0]
    n_layers = wgc.shape[0]
    assert n == 2 * n_item and n_item % TILE == 0 and d % 128 == 0

    # Pack the three per-layer weight matmuls into one (3, D, D) bf16 block per
    # layer (consumed as three accumulating MXU passes); biases pre-summed.
    w_cat = jnp.stack([wgc, wgc2, wbi], axis=1).astype(jnp.bfloat16)   # (L,3,D,D)
    b_cat = (bgc + bgc2 + bbi).astype(jnp.float32)                     # (L,1,D)
    a_bf16 = a_hat.astype(jnp.bfloat16)                                # (N,N)
    ego0_bf16 = ego0.astype(jnp.bfloat16)                              # (N,D)

    def kernel(a_ref, ego0_hbm, w_ref, b_ref, out_ref, ego_scr, edis_scr, dma_sem):
        l = pl.program_id(0)            # layer (sequential carry)
        i = pl.program_id(1)            # row block

        row0 = pl.multiple_of(i * TILE, TILE)
        # oge = cat(text, vision) == ego_0 with its two halves swapped.
        oge_row0 = pl.multiple_of((row0 + n_item) % n, TILE)

        # ego scratch (3n, d) bf16: rows [0,n) hold ego_0 (never overwritten --
        # it is also the oge source), rows [n,2n) / [2n,3n) double-buffer the
        # per-layer ego (layer l reads one slot, writes the other).
        read_base = pl.multiple_of(
            jnp.where(l == 0, 0, (1 + (l - 1) % 2) * n), TILE)
        write_base = pl.multiple_of((1 + l % 2) * n, TILE)

        # One-time staging: DMA ego_0 (bf16) from HBM into slot 0.
        @pl.when((l == 0) & (i == 0))
        def _():
            cp = pltpu.make_async_copy(ego0_hbm, ego_scr.at[pl.ds(0, n), :],
                                       dma_sem)
            cp.start()
            cp.wait()

        a_strip = a_ref[...]                                  # (TILE, N) bf16

        # side = A[rows, :] @ ego   -- single K=N MXU reduction, f32 accumulate.
        ego_cur = ego_scr[pl.ds(read_base, n), :]             # (N, D) bf16
        side = jnp.dot(a_strip, ego_cur, preferred_element_type=jnp.float32)

        # edis = A @ oge is loop-invariant (oge is never updated): compute it
        # once at layer 0 as two half-K dots against the swapped ego_0 halves
        # (no materialized oge), store once into the edis cache.
        @pl.when(l == 0)
        def _():
            e = jnp.dot(a_strip[:, :n_item], ego_scr[pl.ds(n_item, n_item), :],
                        preferred_element_type=jnp.float32)
            e = e + jnp.dot(a_strip[:, n_item:], ego_scr[pl.ds(0, n_item), :],
                            preferred_element_type=jnp.float32)
            edis_scr[pl.ds(row0, TILE), :] = e

        edis = edis_scr[pl.ds(row0, TILE), :]                              # f32
        ego_row = ego_scr[pl.ds(pl.multiple_of(read_base + row0, TILE), TILE),
                          :].astype(jnp.float32)
        oge_row = ego_scr[pl.ds(oge_row0, TILE), :].astype(jnp.float32)

        # bi-interaction term (elementwise, f32)
        bi = ego_row * side + oge_row * edis

        # Fused K=3D weight matmul as three accumulating MXU passes
        # (no concatenate / staging copy), plus the pre-summed bias.
        pre = jnp.dot(side.astype(jnp.bfloat16), w_ref[0],
                      preferred_element_type=jnp.float32)
        pre = pre + jnp.dot(edis.astype(jnp.bfloat16), w_ref[1],
                            preferred_element_type=jnp.float32)
        pre = pre + jnp.dot(bi.astype(jnp.bfloat16), w_ref[2],
                            preferred_element_type=jnp.float32)
        pre = pre + b_ref[...]

        # LeakyReLU(0.2)
        ego_new = jnp.where(pre > 0, pre, LEAKY_SLOPE * pre)
        # TODO(synk): mess_dropout skipped (deterministic eval semantics).

        # F.normalize(p=2, dim=1): x / max(||x||, eps) == x*rsqrt(max(||x||^2, eps^2))
        ss = jnp.sum(ego_new * ego_new, axis=1, keepdims=True)
        norm_e = ego_new * lax.rsqrt(jnp.maximum(ss, NORM_EPS * NORM_EPS))

        # Next layer's ego: stored once, in bf16 (MXU-ready).
        ego_scr[pl.ds(pl.multiple_of(write_base + row0, TILE), TILE), :] = (
            ego_new.astype(jnp.bfloat16))

        # Layer-sum accumulator lives in the (constant-index) output block,
        # which stays VMEM-resident and is written back to HBM once, at grid end.
        @pl.when(l == 0)
        def _():
            out_ref[pl.ds(row0, TILE), :] = ego_row + norm_e

        @pl.when(l > 0)
        def _():
            out_ref[pl.ds(row0, TILE), :] = out_ref[pl.ds(row0, TILE), :] + norm_e

    grid = (n_layers, n // TILE)

    all_emb = pl.pallas_call(
        kernel,
        out_shape=jax.ShapeDtypeStruct((n, d), jnp.float32),
        grid_spec=pltpu.PrefetchScalarGridSpec(
            num_scalar_prefetch=0,
            grid=grid,
            in_specs=[
                pl.BlockSpec((TILE, n), lambda l, i: (i, 0)),              # A row strip
                pl.BlockSpec(memory_space=pl.ANY),                         # ego_0 (HBM, staged once)
                pl.BlockSpec((None, 3, d, d), lambda l, i: (l, 0, 0, 0)),  # [W_gc;W_gc2;W_bi][l]
                pl.BlockSpec((None, 1, d), lambda l, i: (l, 0, 0)),        # summed bias[l]
            ],
            out_specs=pl.BlockSpec((n, d), lambda l, i: (0, 0)),           # resident accumulator
            scratch_shapes=[
                pltpu.VMEM((3 * n, d), jnp.bfloat16),  # [ego_0 | ego ping | ego pong]
                pltpu.VMEM((n, d), jnp.float32),       # cached edis = A @ oge
                pltpu.SemaphoreType.DMA,               # one-time ego_0 staging DMA
            ],
        ),
        compiler_params=pltpu.CompilerParams(
            dimension_semantics=("arbitrary", "arbitrary"),
            vmem_limit_bytes=32 * 1024 * 1024,
        ),
    )(a_bf16, ego0_bf16, w_cat, b_cat)

    v_g = all_emb[:n_item, :]
    t_g = all_emb[n_item:, :]
    return v_g[items], t_g[items]


# --------------------------- parameter / input builders ----------------------
def xavier_uniform(key, shape):
    fan_in, fan_out = shape[-2], shape[-1]
    bound = jnp.sqrt(6.0 / (fan_in + fan_out))
    return jax.random.uniform(key, shape, jnp.float32, -bound, bound)


def init_params(key):
    """Deterministic stand-ins for the weight_dict (stacked across layers)."""
    ks = jax.random.split(key, 6 * N_LAYERS)
    wgc  = jnp.stack([xavier_uniform(ks[6 * k + 0], (EMB, EMB)) for k in range(N_LAYERS)])
    bgc  = jnp.stack([xavier_uniform(ks[6 * k + 1], (1, EMB))   for k in range(N_LAYERS)])
    wbi  = jnp.stack([xavier_uniform(ks[6 * k + 2], (EMB, EMB)) for k in range(N_LAYERS)])
    bbi  = jnp.stack([xavier_uniform(ks[6 * k + 3], (1, EMB))   for k in range(N_LAYERS)])
    wgc2 = jnp.stack([xavier_uniform(ks[6 * k + 4], (EMB, EMB)) for k in range(N_LAYERS)])
    bgc2 = jnp.stack([xavier_uniform(ks[6 * k + 5], (1, EMB))   for k in range(N_LAYERS)])
    return wgc, bgc, wgc2, bgc2, wbi, bbi


def make_norm_adj(key, n):
    """Synthetic symmetric normalized adjacency (dense stand-in for norm_adj)."""
    a = (jax.random.uniform(key, (n, n)) > 0.9).astype(jnp.float32)
    a = jnp.maximum(a, a.T) + jnp.eye(n, dtype=jnp.float32)
    deg = jnp.sum(a, axis=1)
    d_inv_sqrt = 1.0 / jnp.sqrt(jnp.maximum(deg, 1.0))
    return a * d_inv_sqrt[:, None] * d_inv_sqrt[None, :]


def ngcf_reference(items, all_vision, all_text, a_hat, params):
    """Pure-JAX f32 mirror of the PyTorch forward (drop_flag=False / eval)."""
    wgc, bgc, wgc2, bgc2, wbi, bbi = params
    ego = jnp.concatenate([all_vision, all_text], axis=0)
    oge = jnp.concatenate([all_text, all_vision], axis=0)
    n_item = all_vision.shape[0]
    acc = ego
    for k in range(wgc.shape[0]):
        side = a_hat @ ego
        edis = a_hat @ oge
        sum_e = side @ wgc[k] + bgc[k] + edis @ wgc2[k] + bgc2[k]
        bi = (ego * side + oge * edis) @ wbi[k] + bbi[k]
        pre = sum_e + bi
        ego = jnp.where(pre > 0, pre, LEAKY_SLOPE * pre)
        nrm = jnp.sqrt(jnp.sum(ego * ego, axis=1, keepdims=True))
        acc = acc + ego / jnp.maximum(nrm, NORM_EPS)
    return acc[:n_item, :][items], acc[n_item:, :][items]


if __name__ == "__main__":
    key = jax.random.PRNGKey(0)
    k_v, k_t, k_a, k_p = jax.random.split(key, 4)

    all_vision = jax.random.normal(k_v, (N_ITEM, EMB), jnp.float32)
    all_text   = jax.random.normal(k_t, (N_ITEM, EMB), jnp.float32)
    a_hat      = make_norm_adj(k_a, N_NODES)
    params     = init_params(k_p)
    items      = jnp.array([0, 3, 5, 67], dtype=jnp.int32)

    v_emb, t_emb = jax.jit(ngcf_forward)(items, all_vision, all_text, a_hat, params)
    jax.block_until_ready((v_emb, t_emb))

    assert v_emb.shape == (items.shape[0], EMB)
    assert t_emb.shape == (items.shape[0], EMB)

    # Sanity check vs. pure-JAX f32 reference (kernel uses bf16 MXU operands).
    v_ref, t_ref = ngcf_reference(items, all_vision, all_text, a_hat, params)

    def rel_err(x, y):
        return float(jnp.linalg.norm(x - y) / jnp.maximum(jnp.linalg.norm(y), 1e-6))

    assert rel_err(v_emb, v_ref) < 0.05, rel_err(v_emb, v_ref)
    assert rel_err(t_emb, t_ref) < 0.05, rel_err(t_emb, t_ref)

    print("KERNEL_OK")
</pallas_src>

<mosaic_0001>
module attributes {stable_mosaic.version = 11 : i64} {
  func.func @kernel(%arg0: i32, %arg1: i32, %arg2: memref<128x256xbf16, #tpu.memory_space<vmem>>, %arg3: memref<256x128xbf16, #tpu.memory_space<any>>, %arg4: memref<1x3x128x128xbf16, #tpu.memory_space<vmem>>, %arg5: memref<1x1x128xf32, #tpu.memory_space<vmem>>, %arg6: memref<256x128xf32, #tpu.memory_space<vmem>>, %arg7: memref<768x128xbf16, #tpu.memory_space<vmem>>, %arg8: memref<256x128xf32, #tpu.memory_space<vmem>>, %arg9: memref<!tpu.dma_semaphore, #tpu.memory_space<semaphore_mem>>) attributes {dimension_semantics = [#tpu.dimension_semantics<arbitrary>, #tpu.dimension_semantics<arbitrary>], iteration_bounds = array<i64: 3, 2>, scalar_prefetch = 0 : i64, scratch_operands = 3 : i64, tpu.core_type = #tpu.core_type<tc>, window_params = [{transform_indices = @transform_0, window_bounds = array<i64: 128, 256>}, {}, {transform_indices = @transform_2, window_bounds = array<i64: 1, 3, 128, 128>}, {transform_indices = @transform_3, window_bounds = array<i64: 1, 1, 128>}, {pipeline_mode = #tpu.pipeline_mode<synchronous>, transform_indices = @transform_4, window_bounds = array<i64: 256, 128>}]} {
    %c128_i32 = arith.constant 128 : i32
    %0 = arith.muli %arg1, %c128_i32 : i32
    %1 = tpu.assume_multiple %0, 128 : i32
    %c128_i32_0 = arith.constant 128 : i32
    %2 = arith.addi %1, %c128_i32_0 : i32
    %c256_i32 = arith.constant 256 : i32
    %c0_i32 = arith.constant 0 : i32
    %3 = arith.cmpi eq, %c256_i32, %c0_i32 : i32
    %c1_i32 = arith.constant 1 : i32
    %4 = arith.select %3, %c1_i32, %c256_i32 : i32
    %5 = arith.remsi %2, %4 : i32
    %c0_i32_1 = arith.constant 0 : i32
    %6 = arith.cmpi ne, %5, %c0_i32_1 : i32
    %c0_i32_2 = arith.constant 0 : i32
    %7 = arith.cmpi slt, %5, %c0_i32_2 : i32
    %c0_i32_3 = arith.constant 0 : i32
    %8 = arith.cmpi slt, %4, %c0_i32_3 : i32
    %9 = arith.xori %7, %8 : i1
    %10 = arith.andi %9, %6 : i1
    %11 = arith.addi %5, %4 : i32
    %12 = arith.select %10, %11, %5 : i32
    %13 = tpu.assume_multiple %12, 128 : i32
    %c0_i32_4 = arith.constant 0 : i32
    %14 = arith.cmpi eq, %arg0, %c0_i32_4 : i32
    %c1_i32_5 = arith.constant 1 : i32
    %15 = arith.subi %arg0, %c1_i32_5 : i32
    %c2_i32 = arith.constant 2 : i32
    %c0_i32_6 = arith.constant 0 : i32
    %16 = arith.cmpi eq, %c2_i32, %c0_i32_6 : i32
    %c1_i32_7 = arith.constant 1 : i32
    %17 = arith.select %16, %c1_i32_7, %c2_i32 : i32
    %18 = arith.remsi %15, %17 : i32
    %c0_i32_8 = arith.constant 0 : i32
    %19 = arith.cmpi ne, %18, %c0_i32_8 : i32
    %c0_i32_9 = arith.constant 0 : i32
    %20 = arith.cmpi slt, %18, %c0_i32_9 : i32
    %c0_i32_10 = arith.constant 0 : i32
    %21 = arith.cmpi slt, %17, %c0_i32_10 : i32
    %22 = arith.xori %20, %21 : i1
    %23 = arith.andi %22, %19 : i1
    %24 = arith.addi %18, %17 : i32
    %25 = arith.select %23, %24, %18 : i32
    %c1_i32_11 = arith.constant 1 : i32
    %26 = arith.addi %c1_i32_11, %25 : i32
    %c256_i32_12 = arith.constant 256 : i32
    %27 = arith.muli %26, %c256_i32_12 : i32
    %c0_i32_13 = arith.constant 0 : i32
    %28 = arith.select %14, %c0_i32_13, %27 : i32
    %29 = tpu.assume_multiple %28, 128 : i32
    %c2_i32_14 = arith.constant 2 : i32
    %c0_i32_15 = arith.constant 0 : i32
    %30 = arith.cmpi eq, %c2_i32_14, %c0_i32_15 : i32
    %c1_i32_16 = arith.constant 1 : i32
    %31 = arith.select %30, %c1_i32_16, %c2_i32_14 : i32
    %32 = arith.remsi %arg0, %31 : i32
    %c0_i32_17 = arith.constant 0 : i32
    %33 = arith.cmpi ne, %32, %c0_i32_17 : i32
    %c0_i32_18 = arith.constant 0 : i32
    %34 = arith.cmpi slt, %32, %c0_i32_18 : i32
    %c0_i32_19 = arith.constant 0 : i32
    %35 = arith.cmpi slt, %31, %c0_i32_19 : i32
    %36 = arith.xori %34, %35 : i1
    %37 = arith.andi %36, %33 : i1
    %38 = arith.addi %32, %31 : i32
    %39 = arith.select %37, %38, %32 : i32
    %c1_i32_20 = arith.constant 1 : i32
    %40 = arith.addi %c1_i32_20, %39 : i32
    %c256_i32_21 = arith.constant 256 : i32
    %41 = arith.muli %40, %c256_i32_21 : i32
    %42 = tpu.assume_multiple %41, 128 : i32
    %c0_i32_22 = arith.constant 0 : i32
    %43 = arith.cmpi eq, %arg0, %c0_i32_22 : i32
    %c0_i32_23 = arith.constant 0 : i32
    %44 = arith.cmpi eq, %arg1, %c0_i32_23 : i32
    %45 = arith.andi %43, %44 : i1
    %46 = arith.extui %45 : i1 to i32
    %c0_i32_24 = arith.constant 0 : i32
    %47 = arith.cmpi ne, %46, %c0_i32_24 : i32
    scf.if %47 {
      %c0_i32_57 = arith.constant 0 : i32
      %c0_i32_58 = arith.constant 0 : i32
      %110 = tpu.memref_slice %arg7[%c0_i32_57, %c0_i32_58] : memref<768x128xbf16, #tpu.memory_space<vmem>> -> memref<256x128xbf16, #tpu.memory_space<vmem>>
      tpu.enqueue_dma source(%arg3 : memref<256x128xbf16, #tpu.memory_space<any>>) target(%110 : memref<256x128xbf16, #tpu.memory_space<vmem>>) target_semaphore(%arg9 : memref<!tpu.dma_semaphore, #tpu.memory_space<semaphore_mem>>)
      %c0_i32_59 = arith.constant 0 : i32
      %c0_i32_60 = arith.constant 0 : i32
      %111 = tpu.memref_slice %arg7[%c0_i32_59, %c0_i32_60] : memref<768x128xbf16, #tpu.memory_space<vmem>> -> memref<256x128xbf16, #tpu.memory_space<vmem>>
      tpu.wait_dma2 semaphore(%arg9 : memref<!tpu.dma_semaphore, #tpu.memory_space<semaphore_mem>>) src(%arg3 : memref<256x128xbf16, #tpu.memory_space<any>>) dst(%111 : memref<256x128xbf16, #tpu.memory_space<vmem>>)
    } else {
    }
    %c0 = arith.constant 0 : index
    %c0_25 = arith.constant 0 : index
    %48 = vector.load %arg2[%c0, %c0_25] : memref<128x256xbf16, #tpu.memory_space<vmem>>, vector<128x256xbf16>
    %49 = arith.index_cast %29 : i32 to index
    %c0_26 = arith.constant 0 : index
    %50 = vector.load %arg7[%49, %c0_26] : memref<768x128xbf16, #tpu.memory_space<vmem>>, vector<256x128xbf16>
    %cst = arith.constant dense<0.000000e+00> : vector<128x128xf32>
    %51 = tpu.matmul %48, %50, %cst {dimension_numbers = #tpu.dot_dimension_numbers<[1], [0], [0], [1], [0, 0, 1, 1], [], []>} : vector<128x256xbf16>, vector<256x128xbf16>, vector<128x128xf32> -> vector<128x128xf32>
    %c0_i32_27 = arith.constant 0 : i32
    %52 = arith.cmpi eq, %arg0, %c0_i32_27 : i32
    %53 = arith.extui %52 : i1 to i32
    %c0_i32_28 = arith.constant 0 : i32
    %54 = arith.cmpi ne, %53, %c0_i32_28 : i32
    scf.if %54 {
      %110 = vector.extract_strided_slice %48 {offsets = [0, 0], sizes = [128, 128], strides = [1, 1]} : vector<128x256xbf16> to vector<128x128xbf16>
      %c128 = arith.constant 128 : index
      %c0_57 = arith.constant 0 : index
      %111 = vector.load %arg7[%c128, %c0_57] : memref<768x128xbf16, #tpu.memory_space<vmem>>, vector<128x128xbf16>
      %cst_58 = arith.constant dense<0.000000e+00> : vector<128x128xf32>
      %112 = tpu.matmul %110, %111, %cst_58 {dimension_numbers = #tpu.dot_dimension_numbers<[1], [0], [0], [1], [0, 0, 1, 1], [], []>} : vector<128x128xbf16>, vector<128x128xbf16>, vector<128x128xf32> -> vector<128x128xf32>
      %113 = vector.extract_strided_slice %48 {offsets = [0, 128], sizes = [128, 128], strides = [1, 1]} : vector<128x256xbf16> to vector<128x128xbf16>
      %c0_59 = arith.constant 0 : index
      %c0_60 = arith.constant 0 : index
      %114 = vector.load %arg7[%c0_59, %c0_60] : memref<768x128xbf16, #tpu.memory_space<vmem>>, vector<128x128xbf16>
      %cst_61 = arith.constant dense<0.000000e+00> : vector<128x128xf32>
      %115 = tpu.matmul %113, %114, %cst_61 {dimension_numbers = #tpu.dot_dimension_numbers<[1], [0], [0], [1], [0, 0, 1, 1], [], []>} : vector<128x128xbf16>, vector<128x128xbf16>, vector<128x128xf32> -> vector<128x128xf32>
      %116 = arith.addf %112, %115 : vector<128x128xf32>
      %117 = arith.index_cast %1 : i32 to index
      %c0_62 = arith.constant 0 : index
      %118 = vector.load %arg8[%117, %c0_62] : memref<256x128xf32, #tpu.memory_space<vmem>>, vector<128x128xf32>
      tpu.vector_store %arg8[%117, %c0_62], %116 {strides = array<i32>} : memref<256x128xf32, #tpu.memory_space<vmem>>, vector<128x128xf32>,
    } else {
    }
    %55 = arith.index_cast %1 : i32 to index
    %c0_29 = arith.constant 0 : index
    %56 = vector.load %arg8[%55, %c0_29] : memref<256x128xf32, #tpu.memory_space<vmem>>, vector<128x128xf32>
    %57 = arith.addi %29, %1 : i32
    %58 = tpu.assume_multiple %57, 128 : i32
    %59 = arith.index_cast %58 : i32 to index
    %c0_30 = arith.constant 0 : index
    %60 = vector.load %arg7[%59, %c0_30] : memref<768x128xbf16, #tpu.memory_space<vmem>>, vector<128x128xbf16>
    %61 = arith.extf %60 : vector<128x128xbf16> to vector<128x128xf32>
    %62 = arith.index_cast %13 : i32 to index
    %c0_31 = arith.constant 0 : index
    %63 = vector.load %arg7[%62, %c0_31] : memref<768x128xbf16, #tpu.memory_space<vmem>>, vector<128x128xbf16>
    %64 = arith.extf %63 : vector<128x128xbf16> to vector<128x128xf32>
    %65 = arith.mulf %61, %51 : vector<128x128xf32>
    %66 = arith.mulf %64, %56 : vector<128x128xf32>
    %67 = arith.addf %65, %66 : vector<128x128xf32>
    %68 = arith.truncf %51 : vector<128x128xf32> to vector<128x128xbf16>
    %c0_32 = arith.constant 0 : index
    %c0_33 = arith.constant 0 : index
    %c0_34 = arith.constant 0 : index
    %c0_35 = arith.constant 0 : index
    %69 = vector.load %arg4[%c0_32, %c0_33, %c0_34, %c0_35] : memref<1x3x128x128xbf16, #tpu.memory_space<vmem>>, vector<1x1x128x128xbf16>
    %70 = vector.shape_cast %69 : vector<1x1x128x128xbf16> to vector<128x128xbf16>
    %cst_36 = arith.constant dense<0.000000e+00> : vector<128x128xf32>
    %71 = tpu.matmul %68, %70, %cst_36 {dimension_numbers = #tpu.dot_dimension_numbers<[1], [0], [0], [1], [0, 0, 1, 1], [], []>} : vector<128x128xbf16>, vector<128x128xbf16>, vector<128x128xf32> -> vector<128x128xf32>
    %72 = arith.truncf %56 : vector<128x128xf32> to vector<128x128xbf16>
    %c0_37 = arith.constant 0 : index
    %c1 = arith.constant 1 : index
    %c0_38 = arith.constant 0 : index
    %c0_39 = arith.constant 0 : index
    %73 = vector.load %arg4[%c0_37, %c1, %c0_38, %c0_39] : memref<1x3x128x128xbf16, #tpu.memory_space<vmem>>, vector<1x1x128x128xbf16>
    %74 = vector.shape_cast %73 : vector<1x1x128x128xbf16> to vector<128x128xbf16>
    %cst_40 = arith.constant dense<0.000000e+00> : vector<128x128xf32>
    %75 = tpu.matmul %72, %74, %cst_40 {dimension_numbers = #tpu.dot_dimension_numbers<[1], [0], [0], [1], [0, 0, 1, 1], [], []>} : vector<128x128xbf16>, vector<128x128xbf16>, vector<128x128xf32> -> vector<128x128xf32>
    %76 = arith.addf %71, %75 : vector<128x128xf32>
    %77 = arith.truncf %67 : vector<128x128xf32> to vector<128x128xbf16>
    %c0_41 = arith.constant 0 : index
    %c2 = arith.constant 2 : index
    %c0_42 = arith.constant 0 : index
    %c0_43 = arith.constant 0 : index
    %78 = vector.load %arg4[%c0_41, %c2, %c0_42, %c0_43] : memref<1x3x128x128xbf16, #tpu.memory_space<vmem>>, vector<1x1x128x128xbf16>
    %79 = vector.shape_cast %78 : vector<1x1x128x128xbf16> to vector<128x128xbf16>
    %cst_44 = arith.constant dense<0.000000e+00> : vector<128x128xf32>
    %80 = tpu.matmul %77, %79, %cst_44 {dimension_numbers = #tpu.dot_dimension_numbers<[1], [0], [0], [1], [0, 0, 1, 1], [], []>} : vector<128x128xbf16>, vector<128x128xbf16>, vector<128x128xf32> -> vector<128x128xf32>
    %81 = arith.addf %76, %80 : vector<128x128xf32>
    %c0_45 = arith.constant 0 : index
    %c0_46 = arith.constant 0 : index
    %c0_47 = arith.constant 0 : index
    %82 = vector.load %arg5[%c0_45, %c0_46, %c0_47] : memref<1x1x128xf32, #tpu.memory_space<vmem>>, vector<1x1x128xf32>
    %83 = vector.shape_cast %82 : vector<1x1x128xf32> to vector<1x128xf32>
    %84 = vector.broadcast %83 : vector<1x128xf32> to vector<128x128xf32>
    %85 = arith.addf %81, %84 : vector<128x128xf32>
    %cst_48 = arith.constant 0.000000e+00 : f32
    %86 = vector.broadcast %cst_48 : f32 to vector<128x128xf32>
    %87 = arith.cmpf ogt, %85, %86 : vector<128x128xf32>
    %cst_49 = arith.constant 2.000000e-01 : f32
    %88 = vector.broadcast %cst_49 : f32 to vector<128x128xf32>
    %89 = arith.mulf %88, %85 : vector<128x128xf32>
    %90 = arith.select %87, %85, %89 : vector<128x128xi1>, vector<128x128xf32>
    %91 = arith.mulf %90, %90 : vector<128x128xf32>
    %cst_50 = arith.constant dense<0.000000e+00> : vector<128xf32>
    %92 = vector.multi_reduction <add>, %91, %cst_50 [1] : vector<128x128xf32> to vector<128xf32>
    %93 = vector.shape_cast %92 : vector<128xf32> to vector<128x1xf32>
    %cst_51 = arith.constant 1.000000e-24 : f32
    %94 = vector.broadcast %cst_51 : f32 to vector<128x1xf32>
    %95 = arith.maximumf %93, %94 : vector<128x1xf32>
    %96 = math.rsqrt %95 : vector<128x1xf32>
    %97 = vector.broadcast %96 : vector<128x1xf32> to vector<128x128xf32>
    %98 = arith.mulf %90, %97 : vector<128x128xf32>
    %99 = arith.truncf %90 : vector<128x128xf32> to vector<128x128xbf16>
    %100 = arith.addi %42, %1 : i32
    %101 = tpu.assume_multiple %100, 128 : i32
    %102 = arith.index_cast %101 : i32 to index
    %c0_52 = arith.constant 0 : index
    %103 = vector.load %arg7[%102, %c0_52] : memref<768x128xbf16, #tpu.memory_space<vmem>>, vector<128x128xbf16>
    tpu.vector_store %arg7[%102, %c0_52], %99 {strides = array<i32>} : memref<768x128xbf16, #tpu.memory_space<vmem>>, vector<128x128xbf16>,
    %c0_i32_53 = arith.constant 0 : i32
    %104 = arith.cmpi eq, %arg0, %c0_i32_53 : i32
    %105 = arith.extui %104 : i1 to i32
    %c0_i32_54 = arith.constant 0 : i32
    %106 = arith.cmpi ne, %105, %c0_i32_54 : i32
    scf.if %106 {
      %110 = arith.addf %61, %98 : vector<128x128xf32>
      %111 = arith.index_cast %1 : i32 to index
      %c0_57 = arith.constant 0 : index
      %112 = vector.load %arg6[%111, %c0_57] : memref<256x128xf32, #tpu.memory_space<vmem>>, vector<128x128xf32>
      tpu.vector_store %arg6[%111, %c0_57], %110 {strides = array<i32>} : memref<256x128xf32, #tpu.memory_space<vmem>>, vector<128x128xf32>,
    } else {
    }
    %c0_i32_55 = arith.constant 0 : i32
    %107 = arith.cmpi sgt, %arg0, %c0_i32_55 : i32
    %108 = arith.extui %107 : i1 to i32
    %c0_i32_56 = arith.constant 0 : i32
    %109 = arith.cmpi ne, %108, %c0_i32_56 : i32
    scf.if %109 {
      %110 = arith.index_cast %1 : i32 to index
      %c0_57 = arith.constant 0 : index
      %111 = vector.load %arg6[%110, %c0_57] : memref<256x128xf32, #tpu.memory_space<vmem>>, vector<128x128xf32>
      %112 = arith.addf %111, %98 : vector<128x128xf32>
      %113 = arith.index_cast %1 : i32 to index
      %c0_58 = arith.constant 0 : index
      %114 = vector.load %arg6[%113, %c0_58] : memref<256x128xf32, #tpu.memory_space<vmem>>, vector<128x128xf32>
      tpu.vector_store %arg6[%113, %c0_58], %112 {strides = array<i32>} : memref<256x128xf32, #tpu.memory_space<vmem>>, vector<128x128xf32>,
    } else {
    }
    return
  }
  func.func @transform_0(%arg0: i32, %arg1: i32) -> (i32, i32) {
    %c0_i32 = arith.constant 0 : i32
    %c0_i32_0 = arith.constant 0 : i32
    return %arg1, %c0_i32 : i32, i32
  }
  func.func @transform_2(%arg0: i32, %arg1: i32) -> (i32, i32, i32, i32) {
    %c0_i32 = arith.constant 0 : i32
    %c0_i32_0 = arith.constant 0 : i32
    %c0_i32_1 = arith.constant 0 : i32
    %c0_i32_2 = arith.constant 0 : i32
    return %arg0, %c0_i32, %c0_i32_0, %c0_i32_1 : i32, i32, i32, i32
  }
  func.func @transform_3(%arg0: i32, %arg1: i32) -> (i32, i32, i32) {
    %c0_i32 = arith.constant 0 : i32
    %c0_i32_0 = arith.constant 0 : i32
    %c0_i32_1 = arith.constant 0 : i32
    return %arg0, %c0_i32, %c0_i32_0 : i32, i32, i32
  }
  func.func @transform_4(%arg0: i32, %arg1: i32) -> (i32, i32) {
    %c0_i32 = arith.constant 0 : i32
    %c0_i32_0 = arith.constant 0 : i32
    %c0_i32_1 = arith.constant 0 : i32
    return %c0_i32, %c0_i32_0 : i32, i32
  }
}

</mosaic_0001>

<bundles_post_ra>
// kernel: ngcf_forward.1
= control target key start
LH: loop header
LB: loop body
LE: loop exit
PB: predicated region body
PF: predicated region fallthrough
CT: control target
= control target key end

     0   :  { %s2951_s15 = smov 0   ;;  %s2953_s16 = smov 0   ;;  %s3782_s0 = inlined_call_operand.vmem [shape: bf16[256,256], index: 0, kind: input, shape index: {}]   ;;  %s3783_s1 = inlined_call_operand.vmem [shape: bf16[256,128], index: 1, kind: input, shape index: {}]   ;;  %s3784_s2 = inlined_call_operand.vmem [shape: bf16[3,3,128,128], index: 2, kind: input, shape index: {}]   ;;  %s3785_s3 = inlined_call_operand.vmem [shape: f32[3,1,128], index: 3, kind: input, shape index: {}]   ;;  %s3786_s4 = inlined_call_operand.vmem [shape: f32[256,128], index: 4, kind: output, shape index: {}]  }
   0x1   :  { %s2955_s17 = smov 0   ;;  %s2957_s18 = smov 0  }
   0x2   :  { %s2959_s19 = smov 0  }
   0x3 LB: > { %s23_s20 = sadd.s32 1, %s2916_s17  ;;  %s26_s21 = sadd.s32 1, %s2920_s18  ;;  %s2924_s19 = sphi %s2959_s19, %s14_s19   ;;  %s2920_s18 = sphi %s2957_s18, %s3806_s18   ;;  %s2916_s17 = sphi %s2955_s17, %s3805_s17   ;;  %s2912_s16 = sphi %s2953_s16, %s3804_s16   ;;  %s2908_s15 = sphi %s2951_s15, %s3803_s15  }
   0x4   : > { %p24_p0 = scmp.ge.s32.totalorder %s23_s20, 2  ;;  %p2100_p1 = scmp.ge.s32.totalorder %s2924_s19, 1 }
   0x5   : > { %p165_p2 = scmp.lt.s32.totalorder %s2924_s19, 7 }
   0x6   : > { %s3808_s20 = smov (%p24_p0, %s23_s20), 0  ;;  %s3810_s21 = smov (!%p24_p0, %s26_s21), %s2920_s18 }
   0x7   : > { %p166_p3 = pnand %p2100_p1, %p165_p2  ;;  %p28_p4 = scmp.ge.s32.totalorder %s3810_s21, 3 }
   0x8   : > { %s2101_s22 = sshll.u32 (!%p166_p3), %s2908_s15, 4  ;;  %p200_p5 = scmp.lt.s32.totalorder (!%p166_p3), %s2912_s16, 2 }
   0x9   : > { %s3812_s21 = smov (%p28_p4, %s3810_s21), 0  ;;  %169 = sbr.rel (%p166_p3) target bundleno = 1054 (0x41e), region = 32 }
   0xa   : > { %p194_p6 = scmp.lt.s32.totalorder (!%p166_p3), %s2101_s22, 31  ;;  %s2988_s23 = sshll.u32 (!%p166_p3), %s2908_s15, 7 }
   0xb   : > { %s210_s30 = sadd.s32 (!%p166_p3), 128, %s2988_s23  ;;  %p223_p8 = scmp.eq.s32.totalorder (!%p166_p3), %s2912_s16, 0 }
   0xc   : > { %p211_p7 = scmp.lt.s32.totalorder (!%p166_p3), %s210_s30, 0  ;;  %s212_s11 = ssub.s32 (!%p166_p3), 0, %s210_s30 }
   0xd   : > { %s2106_s12 = smin.u32 (!%p166_p3), %s212_s11, %s210_s30  ;;  %s2109_s14 = sadd.s32 (!%p166_p3), 4294967295, %s2912_s16 }
   0xe   : > { %s2991_s24 = scalar_select %p200_p5, %s2912_s16, 2 }
   0xf   : > { %s3814_s22 = smov (!%p194_p6, %s2101_s22), 31  ;;  %s214_s13 = sand.u32 255, %s2106_s12  }
  0x10   : > { %s2731_s25 = smul.u32 192, %s2991_s24  ;;  %s207_s28 = scalar_lea.vmem %s3785_s3, %s2991_s24 }
  0x11   : > { %s2249_s29 = sshll.u32 %s3814_s22, 3  ;;  %s215_s22 = ssub.s32 0, %s214_s13 }
  0x12   : > { %s3002_s7 = scalar_lea.vmem %s3782_s0, %s2249_s29  ;;  %s3007_s10 = scalar_lea.vmem %s3784_s2, %s2731_s25 }
  0x13   : > { %p225_p9 = scmp.lt.s32.totalorder %s2109_s14, 0  ;;  %s3816_s22 = smov (!%p211_p7, %s215_s22), %s214_s13 }
  0x14   : > { %s226_s26 = ssub.s32 0, %s2109_s14  ;;  %p240_p10 = scmp.lt.s32.totalorder %s2912_s16, 0 }
  0x15   : > { %p2108_p11 = scmp.lt.s32.totalorder %s3816_s22, 0  ;;  %s221_s27 = sadd.s32 256, %s3816_s22 }
  0x16   : > { %s2110_s29 = smin.u32 %s2109_s14, %s226_s26  ;;  %s241_s5 = ssub.s32 0, %s2912_s16 }
  0x17   : > { %s3818_s27 = smov (!%p2108_p11, %s221_s27), %s3816_s22  ;;  %s228_s25 = sand.u32 1, %s2110_s29  }
  0x18   : > { %s2114_s30 = smin.u32 %s2912_s16, %s241_s5  ;;  %s229_s6 = ssub.s32 0, %s228_s25 }
  0x19   : > { %s243_s8 = sand.u32 1, %s2114_s30   ;;  %s3820_s6 = smov (!%p225_p9, %s229_s6), %s228_s25 }
  0x1a   : > { %s244_s9 = ssub.s32 0, %s243_s8  ;;  %p254_p12 = scmp.eq.s32.totalorder %s2908_s15, 0 }
  0x1b   : > { %p2112_p13 = scmp.lt.s32.totalorder %s3820_s6, 0  ;;  %s235_s11 = sadd.s32 2, %s3820_s6 }
  0x1c   : > { %s3822_s9 = smov (!%p240_p10, %s244_s9), %s243_s8  ;;  %p255_p1 = pnand %p254_p12, %p223_p8 }
  0x1d   : > { %s3824_s11 = smov (!%p2112_p13, %s235_s11), %s3820_s6  ;;  %p2116_p0 = scmp.lt.s32.totalorder %s3822_s9, 0 }
  0x1e   : > { %s250_s12 = sadd.s32 2, %s3822_s9  ;;  %s2250_s13 = sshll.u32 %s3824_s11, 8 }
  0x1f   : > { %s2251_s14 = sadd.s32 256, %s2250_s13  ;;  %s3828_s12 = smov (!%p2116_p0, %s250_s12), %s3822_s9 }
  0x20   : > { %s3826_s14 = smov (%p223_p8, %s2251_s14), 0  ;;  %s2252_s22 = sshll.u32 %s3828_s12, 8 }
  0x21   : > { %s3025_s26 = sadd.s32 256, %s2252_s22  ;;  %258 = sbr.rel (%p255_p1) target bundleno = 50 (0x32), region = 36 }
  0x26   : > { %v292_v0 = vld [vmem:[%s3783_s1] sm:$0xff]  ;;  %v294_v1 = vld [vmem:[%s3783_s1 + $0x8] sm:$0xff]  ;;  %v296_v2 = vld [vmem:[%s3783_s1 + $0x10] sm:$0xff] }
  0x27   : > { %293 = vst [vmem:[#allocation2] sm:$0xff] %v292_v0  ;;  %295 = vst [vmem:[#allocation2 + $0x8] sm:$0xff] %v294_v1  ;;  %v298_v3 = vld [vmem:[%s3783_s1 + $0x18] sm:$0xff]  ;;  %v300_v4 = vld [vmem:[%s3783_s1 + $0x20] sm:$0xff] }
  0x28   : > { %297 = vst [vmem:[#allocation2 + $0x10] sm:$0xff] %v296_v2  ;;  %v302_v5 = vld [vmem:[%s3783_s1 + $0x28] sm:$0xff]  ;;  %299 = vst [vmem:[#allocation2 + $0x18] sm:$0xff] %v298_v3  ;;  %v304_v6 = vld [vmem:[%s3783_s1 + $0x30] sm:$0xff] }
  0x29   : > { %301 = vst [vmem:[#allocation2 + $0x20] sm:$0xff] %v300_v4  ;;  %303 = vst [vmem:[#allocation2 + $0x28] sm:$0xff] %v302_v5  ;;  %v306_v7 = vld [vmem:[%s3783_s1 + $0x38] sm:$0xff]  ;;  %v308_v8 = vld [vmem:[%s3783_s1 + $0x40] sm:$0xff] }
  0x2a   : > { %305 = vst [vmem:[#allocation2 + $0x30] sm:$0xff] %v304_v6  ;;  %307 = vst [vmem:[#allocation2 + $0x38] sm:$0xff] %v306_v7  ;;  %v310_v9 = vld [vmem:[%s3783_s1 + $0x48] sm:$0xff]  ;;  %v312_v10 = vld [vmem:[%s3783_s1 + $0x50] sm:$0xff] }
  0x2b   : > { %309 = vst [vmem:[#allocation2 + $0x40] sm:$0xff] %v308_v8  ;;  %v314_v11 = vld [vmem:[%s3783_s1 + $0x58] sm:$0xff]  ;;  %311 = vst [vmem:[#allocation2 + $0x48] sm:$0xff] %v310_v9  ;;  %v316_v12 = vld [vmem:[%s3783_s1 + $0x60] sm:$0xff] }
  0x2c   : > { %313 = vst [vmem:[#allocation2 + $0x50] sm:$0xff] %v312_v10  ;;  %315 = vst [vmem:[#allocation2 + $0x58] sm:$0xff] %v314_v11  ;;  %v318_v13 = vld [vmem:[%s3783_s1 + $0x68] sm:$0xff]  ;;  %v320_v14 = vld [vmem:[%s3783_s1 + $0x70] sm:$0xff] }
  0x2d   : > { %317 = vst [vmem:[#allocation2 + $0x60] sm:$0xff] %v316_v12  ;;  %319 = vst [vmem:[#allocation2 + $0x68] sm:$0xff] %v318_v13  ;;  %v322_v15 = vld [vmem:[%s3783_s1 + $0x78] sm:$0xff] }
  0x2e   : > { %321 = vst [vmem:[#allocation2 + $0x70] sm:$0xff] %v320_v14  ;;  %323 = vst [vmem:[#allocation2 + $0x78] sm:$0xff] %v322_v15 }
  0x2f   : > { %331 = vsyncadd [#allocation4], 2048 }
  0x30   : > { %2904 = dma.done.wait [#allocation4], 2048 }
  0x31   : > { %2905 = vsyncadd [#allocation4], 4294965248 }
  0x32 PF: > { %s352_s11 = sshra.s32 %s3826_s14, 3  ;;  %v3077_v16 = vld [vmem:[%s3002_s7 + $0x4] ss:$8 sps:$4 sm:$0xff]   ;;  %v3103_v34 = vld [vmem:[%s3002_s7] ss:$8 sps:$4 sm:$0xff]   ;;  %p2151_p2 = scmp.ne.s32.totalorder %s2912_s16, 0 }
  0x33   : > { %s2118_s12 = sshll.u32 %s352_s11, 2  ;;  %v3080_v17 = vld [vmem:[%s3002_s7 + $0x44] ss:$8 sps:$4 sm:$0xff]   ;;  %596 = vmatprep.mubr.bf16.mxu0 %v3077_v16  ;;  %v3106_v35 = vld [vmem:[%s3002_s7 + $0x40] ss:$8 sps:$4 sm:$0xff]  }
  0x34   : > { %s3082_s13 = scalar_lea.vmem [#allocation2], %s2118_s12  ;;  %628 = vmatprep.mubr.bf16.mxu1 %v3080_v17  ;;  %v3109_v36 = vld [vmem:[%s3002_s7 + $0x14] ss:$8 sps:$4 sm:$0xff]   ;;  %v3119_v38 = vld [vmem:[%s3002_s7 + $0x10] ss:$8 sps:$4 sm:$0xff]  }
  0x35   : > { %v2772_v18 = vld [vmem:[%s3082_s13 + $0x78] sm:$0xff]   ;;  %v2774_v20 = vld [vmem:[%s3082_s13 + $0x70] sm:$0xff]   ;;  %v2776_v22 = vld [vmem:[%s3082_s13 + $0x68] sm:$0xff]  }
  0x36   : > { %v2773_v19 = vld [vmem:[%s3082_s13 + $0x38] sm:$0xff]   ;;  %2395 = vmatprep.subr.bf16.mxu0 %v2772_v18  ;;  %2699 = vmatprep.subr.bf16.mxu1 %v2772_v18  ;;  %v2775_v21 = vld [vmem:[%s3082_s13 + $0x30] sm:$0xff]   ;;  %v2777_v23 = vld [vmem:[%s3082_s13 + $0x28] sm:$0xff]  }
  0x37   : > { %2396 = vmatpush3.bf16.msra.mxu0 %v2773_v19  ;;  %2707 = vmatpush3.bf16.msra.mxu1 %v2773_v19  ;;  %v2778_v24 = vld [vmem:[%s3082_s13 + $0x60] sm:$0xff]   ;;  %v2780_v26 = vld [vmem:[%s3082_s13 + $0x58] sm:$0xff]   ;;  %v2782_v28 = vld [vmem:[%s3082_s13 + $0x50] sm:$0xff]  }
  0x38   : > { %2397 = vmatprep.subr.bf16.mxu0 %v2774_v20  ;;  %2700 = vmatprep.subr.bf16.mxu1 %v2774_v20  ;;  %v2779_v25 = vld [vmem:[%s3082_s13 + $0x20] sm:$0xff]   ;;  %v2781_v27 = vld [vmem:[%s3082_s13 + $0x18] sm:$0xff]   ;;  %v2783_v29 = vld [vmem:[%s3082_s13 + $0x10] sm:$0xff]  }
  0x39   : > { %v2784_v30 = vld [vmem:[%s3082_s13 + $0x48] sm:$0xff]   ;;  %v2786_v32 = vld [vmem:[%s3082_s13 + $0x40] sm:$0xff]   ;;  %v3112_v37 = vld [vmem:[%s3002_s7 + $0x54] ss:$8 sps:$4 sm:$0xff]  }
  0x3a   : > { %v2785_v31 = vld [vmem:[%s3082_s13 + $0x8] sm:$0xff]   ;;  %v2787_v33 = vld [vmem:[%s3082_s13] sm:$0xff]   ;;  %v3122_v39 = vld [vmem:[%s3002_s7 + $0x50] ss:$8 sps:$4 sm:$0xff]  }
  0x3b   : > { %2398 = vmatpush3.bf16.msra.mxu0 %v2775_v21  ;;  %2708 = vmatpush3.bf16.msra.mxu1 %v2775_v21  ;;  %v3125_v40 = vld [vmem:[%s3002_s7 + $0x24] ss:$8 sps:$4 sm:$0xff]   ;;  %v3135_v42 = vld [vmem:[%s3002_s7 + $0x20] ss:$8 sps:$4 sm:$0xff]   ;;  %v3141_v44 = vld [vmem:[%s3002_s7 + $0x34] ss:$8 sps:$4 sm:$0xff]  }
  0x3c   : > { %2399 = vmatprep.subr.bf16.mxu0 %v2776_v22  ;;  %2701 = vmatprep.subr.bf16.mxu1 %v2776_v22  ;;  %v3128_v41 = vld [vmem:[%s3002_s7 + $0x64] ss:$8 sps:$4 sm:$0xff]   ;;  %v3138_v43 = vld [vmem:[%s3002_s7 + $0x60] ss:$8 sps:$4 sm:$0xff]   ;;  %v3144_v45 = vld [vmem:[%s3002_s7 + $0x74] ss:$8 sps:$4 sm:$0xff]  }
  0x3d   : > { %v3151_v46 = vld [vmem:[%s3002_s7 + $0x30] ss:$8 sps:$4 sm:$0xff]  }
  0x3e   : > { %v3154_v47 = vld [vmem:[%s3002_s7 + $0x70] ss:$8 sps:$4 sm:$0xff]   ;;  %s3210_s7 = scalar_lea.vmem (!%p2151_p2), [#allocation3], %s2988_s23 }
  0x3f   : > { %2400 = vmatpush3.bf16.msra.mxu0 %v2777_v23  ;;  %2709 = vmatpush3.bf16.msra.mxu1 %v2777_v23 }
  0x40   : > { %2401 = vmatprep.subr.bf16.mxu0 %v2778_v24  ;;  %2702 = vmatprep.subr.bf16.mxu1 %v2778_v24 }
  0x43   : > { %2402 = vmatpush3.bf16.msra.mxu0 %v2779_v25  ;;  %2710 = vmatpush3.bf16.msra.mxu1 %v2779_v25 }
  0x44   : > { %2403 = vmatprep.subr.bf16.mxu0 %v2780_v26  ;;  %2703 = vmatprep.subr.bf16.mxu1 %v2780_v26 }
  0x47   : > { %2404 = vmatpush3.bf16.msra.mxu0 %v2781_v27  ;;  %2711 = vmatpush3.bf16.msra.mxu1 %v2781_v27 }
  0x48   : > { %2405 = vmatprep.subr.bf16.mxu0 %v2782_v28  ;;  %2704 = vmatprep.subr.bf16.mxu1 %v2782_v28 }
  0x4b   : > { %2406 = vmatpush3.bf16.msra.mxu0 %v2783_v29  ;;  %2712 = vmatpush3.bf16.msra.mxu1 %v2783_v29 }
  0x4c   : > { %2407 = vmatprep.subr.bf16.mxu0 %v2784_v30  ;;  %2705 = vmatprep.subr.bf16.mxu1 %v2784_v30 }
  0x4f   : > { %2408 = vmatpush3.bf16.msra.mxu0 %v2785_v31  ;;  %2713 = vmatpush3.bf16.msra.mxu1 %v2785_v31 }
  0x50   : > { %2409 = vmatprep.subr.bf16.mxu0 %v2786_v32  ;;  %2706 = vmatprep.subr.bf16.mxu1 %v2786_v32 }
  0x53   : > { %2410 = vmatpush3.bf16.msra.mxu0 %v2787_v33  ;;  %2714 = vmatpush3.bf16.msra.mxu1 %v2787_v33 }
  0x56   : > { %597 = vmatmul.mubr.bf16.vlgmr.msra.gmra.mxu0 %v3103_v34  ;;  %629 = vmatmul.mubr.bf16.vlgmr.msra.gmra.mxu1 %v3106_v35 }
  0x57   : > { %604 = vmatprep.mubr.bf16.mxu0 %v3109_v36  ;;  %636 = vmatprep.mubr.bf16.mxu1 %v3112_v37 }
  0x5e   : > { %605 = vmatmul.mubr.bf16.gmra.mxu0 %v3119_v38  ;;  %637 = vmatmul.mubr.bf16.gmra.mxu1 %v3122_v39 }
  0x5f   : > { %612 = vmatprep.mubr.bf16.mxu0 %v3125_v40  ;;  %644 = vmatprep.mubr.bf16.mxu1 %v3128_v41 }
  0x66   : > { %613 = vmatmul.mubr.bf16.gmra.mxu0 %v3135_v42  ;;  %645 = vmatmul.mubr.bf16.gmra.mxu1 %v3138_v43 }
  0x67   : > { %620 = vmatprep.mubr.bf16.mxu0 %v3141_v44  ;;  %652 = vmatprep.mubr.bf16.mxu1 %v3144_v45 }
  0x6e   : > { %621 = vmatmul.mubr.bf16.gmra.mxu0 %v3151_v46  ;;  %653 = vmatmul.mubr.bf16.gmra.mxu1 %v3154_v47 }
 0x116   : > { %v2411_v48 = vpop.f32.mrf.mxu0  ;;  %v2435_v49 = vpop.f32.mrf.mxu1 }
 0x118   : > { %v2412_v50 = vpop.f32.mrf.mxu0  ;;  %v2436_v51 = vpop.f32.mrf.mxu1 }
 0x119   : > { %v3158_v52 = vadd.f32 %v2412_v50, %v2411_v48  ;;  %v3160_v53 = vadd.f32 %v2436_v51, %v2435_v49 }
 0x11a   : > { %v2414_v54 = vpop.f32.mrf.mxu0  ;;  %v2438_v55 = vpop.f32.mrf.mxu1 }
 0x11c   : > { %v2415_v56 = vpop.f32.mrf.mxu0  ;;  %v2439_v57 = vpop.f32.mrf.mxu1 }
 0x11d   : > { %v3162_v58 = vadd.f32 %v2415_v56, %v2414_v54  ;;  %v3164_v59 = vadd.f32 %v2439_v57, %v2438_v55 }
 0x11e   : > { %v2417_v60 = vpop.f32.mrf.mxu0  ;;  %v2441_v61 = vpop.f32.mrf.mxu1 }
 0x120   : > { %v2418_v62 = vpop.f32.mrf.mxu0  ;;  %v2442_v63 = vpop.f32.mrf.mxu1 }
 0x121   : > { %v3166_v0 = vadd.f32 %v2418_v62, %v2417_v60  ;;  %v3168_v1 = vadd.f32 %v2442_v63, %v2441_v61 }
 0x122   : > { %v2420_v2 = vpop.f32.mrf.mxu0  ;;  %v2444_v3 = vpop.f32.mrf.mxu1 }
 0x124   : > { %v2421_v4 = vpop.f32.mrf.mxu0  ;;  %v2445_v5 = vpop.f32.mrf.mxu1 }
 0x125   : > { %v3170_v6 = vadd.f32 %v2421_v4, %v2420_v2  ;;  %v3172_v7 = vadd.f32 %v2445_v5, %v2444_v3 }
 0x126   : > { %v2423_v8 = vpop.f32.mrf.mxu0  ;;  %v2447_v9 = vpop.f32.mrf.mxu1 }
 0x128   : > { %v2424_v10 = vpop.f32.mrf.mxu0  ;;  %v2448_v11 = vpop.f32.mrf.mxu1 }
 0x129   : > { %v3174_v12 = vadd.f32 %v2424_v10, %v2423_v8  ;;  %v3176_v13 = vadd.f32 %v2448_v11, %v2447_v9 }
 0x12a   : > { %v2426_v14 = vpop.f32.mrf.mxu0  ;;  %v2450_v15 = vpop.f32.mrf.mxu1 }
 0x12c   : > { %v2427_v18 = vpop.f32.mrf.mxu0  ;;  %v2451_v19 = vpop.f32.mrf.mxu1 }
 0x12d   : > { %v3178_v20 = vadd.f32 %v2427_v18, %v2426_v14  ;;  %v3180_v21 = vadd.f32 %v2451_v19, %v2450_v15 }
 0x12e   : > { %v2429_v22 = vpop.f32.mrf.mxu0  ;;  %v2453_v23 = vpop.f32.mrf.mxu1 }
 0x130   : > { %v2430_v24 = vpop.f32.mrf.mxu0  ;;  %v2454_v25 = vpop.f32.mrf.mxu1 }
 0x131   : > { %v3182_v26 = vadd.f32 %v2430_v24, %v2429_v22  ;;  %v3184_v27 = vadd.f32 %v2454_v25, %v2453_v23  ;;  %663 = sbr.rel (%p2151_p2) target bundleno = 570 (0x23a), region = 74 }
 0x132   : > { %v2432_v28 = vpop.f32.mrf.mxu0  ;;  %v2456_v29 = vpop.f32.mrf.mxu1 }
 0x134   : > { %v2433_v30 = vpop.f32.mrf.mxu0  ;;  %v2457_v31 = vpop.f32.mrf.mxu1 }
 0x135   : > { %v3186_v32 = vadd.f32 %v2433_v30, %v2432_v28  ;;  %v3188_v33 = vadd.f32 %v2457_v31, %v2456_v29 }
 0x136   : > { %v2812_v48 = vld [vmem:[#allocation2 + $0x38] sm:$0xff]   ;;  %2555 = vmatprep.mubr.bf16.mxu0 %v3077_v16  ;;  %2587 = vmatprep.mubr.bf16.mxu1 %v3103_v34  ;;  %v2814_v50 = vld [vmem:[#allocation2 + $0x30] sm:$0xff]   ;;  %v2816_v54 = vld [vmem:[#allocation2 + $0x28] sm:$0xff]  }
 0x137   : > { %v2813_v49 = vld [vmem:[#allocation2 + $0x78] sm:$0xff]   ;;  %2539 = vmatprep.subr.bf16.mxu0 %v2812_v48  ;;  %v2815_v51 = vld [vmem:[#allocation2 + $0x70] sm:$0xff]   ;;  %v2817_v55 = vld [vmem:[#allocation2 + $0x68] sm:$0xff]  }
 0x138   : > { %2571 = vmatprep.subr.bf16.mxu1 %v2813_v49  ;;  %2540 = vmatpush3.bf16.msra.mxu0 %v2812_v48  ;;  %v2818_v56 = vld [vmem:[#allocation2 + $0x20] sm:$0xff]   ;;  %v2820_v16 = vld [vmem:[#allocation2 + $0x18] sm:$0xff]   ;;  %v2822_v60 = vld [vmem:[#allocation2 + $0x10] sm:$0xff]  }
 0x139   : > { %2572 = vmatpush3.bf16.msra.mxu1 %v2813_v49  ;;  %2541 = vmatprep.subr.bf16.mxu0 %v2814_v50  ;;  %v2819_v57 = vld [vmem:[#allocation2 + $0x60] sm:$0xff]   ;;  %v2821_v34 = vld [vmem:[#allocation2 + $0x58] sm:$0xff]   ;;  %v2823_v61 = vld [vmem:[#allocation2 + $0x50] sm:$0xff]  }
 0x13a   : > { %2573 = vmatprep.subr.bf16.mxu1 %v2815_v51  ;;  %v2824_v62 = vld [vmem:[#allocation2 + $0x8] sm:$0xff]   ;;  %v2826_v2 = vld [vmem:[#allocation2] sm:$0xff]  }
 0x13b   : > { %v2825_v63 = vld [vmem:[#allocation2 + $0x48] sm:$0xff]   ;;  %v2827_v3 = vld [vmem:[#allocation2 + $0x40] sm:$0xff]  }
 0x13c   : > { %2542 = vmatpush3.bf16.msra.mxu0 %v2814_v50 }
 0x13d   : > { %2574 = vmatpush3.bf16.msra.mxu1 %v2815_v51  ;;  %2543 = vmatprep.subr.bf16.mxu0 %v2816_v54 }
 0x13e   : > { %2575 = vmatprep.subr.bf16.mxu1 %v2817_v55 }
 0x140   : > { %2544 = vmatpush3.bf16.msra.mxu0 %v2816_v54 }
 0x141   : > { %2576 = vmatpush3.bf16.msra.mxu1 %v2817_v55  ;;  %2545 = vmatprep.subr.bf16.mxu0 %v2818_v56 }
 0x142   : > { %2577 = vmatprep.subr.bf16.mxu1 %v2819_v57 }
 0x144   : > { %2546 = vmatpush3.bf16.msra.mxu0 %v2818_v56 }
 0x145   : > { %2578 = vmatpush3.bf16.msra.mxu1 %v2819_v57  ;;  %2547 = vmatprep.subr.bf16.mxu0 %v2820_v16 }
 0x146   : > { %2579 = vmatprep.subr.bf16.mxu1 %v2821_v34 }
 0x148   : > { %2548 = vmatpush3.bf16.msra.mxu0 %v2820_v16 }
 0x149   : > { %2580 = vmatpush3.bf16.msra.mxu1 %v2821_v34  ;;  %2549 = vmatprep.subr.bf16.mxu0 %v2822_v60 }
 0x14a   : > { %2581 = vmatprep.subr.bf16.mxu1 %v2823_v61 }
 0x14c   : > { %2550 = vmatpush3.bf16.msra.mxu0 %v2822_v60 }
 0x14d   : > { %2582 = vmatpush3.bf16.msra.mxu1 %v2823_v61  ;;  %2551 = vmatprep.subr.bf16.mxu0 %v2824_v62 }
 0x14e   : > { %2583 = vmatprep.subr.bf16.mxu1 %v2825_v63 }
 0x150   : > { %2552 = vmatpush3.bf16.msra.mxu0 %v2824_v62 }
 0x151   : > { %2584 = vmatpush3.bf16.msra.mxu1 %v2825_v63  ;;  %2553 = vmatprep.subr.bf16.mxu0 %v2826_v2 }
 0x152   : > { %2585 = vmatprep.subr.bf16.mxu1 %v2827_v3 }
 0x154   : > { %2554 = vmatpush3.bf16.msra.mxu0 %v2826_v2 }
 0x155   : > { %2586 = vmatpush3.bf16.msra.mxu1 %v2827_v3 }
 0x157   : > { %2556 = vmatmul.mubr.bf16.vlgmr.msra.gmra.mxu0 %v3109_v36 }
 0x158   : > { %2588 = vmatmul.mubr.bf16.vlgmr.msra.gmra.mxu1 %v3119_v38  ;;  %2559 = vmatprep.mubr.bf16.mxu0 %v3125_v40 }
 0x159   : > { %2591 = vmatprep.mubr.bf16.mxu1 %v3135_v42 }
 0x15f   : > { %2560 = vmatmul.mubr.bf16.gmra.mxu0 %v3141_v44 }
 0x160   : > { %2592 = vmatmul.mubr.bf16.gmra.mxu1 %v3151_v46  ;;  %2563 = vmatprep.mubr.bf16.mxu0 %v3080_v17 }
 0x161   : > { %2595 = vmatprep.mubr.bf16.mxu1 %v3106_v35 }
 0x167   : > { %2564 = vmatmul.mubr.bf16.gmra.mxu0 %v3112_v37 }
 0x168   : > { %2596 = vmatmul.mubr.bf16.gmra.mxu1 %v3122_v39  ;;  %2567 = vmatprep.mubr.bf16.mxu0 %v3128_v41 }
 0x169   : > { %2599 = vmatprep.mubr.bf16.mxu1 %v3138_v43 }
 0x16f   : > { %2568 = vmatmul.mubr.bf16.gmra.mxu0 %v3144_v45 }
 0x170   : > { %2600 = vmatmul.mubr.bf16.gmra.mxu1 %v3154_v47 }
 0x217   : > { %v2557_v36 = vpop.f32.mrf.mxu0 }
 0x218   : > { %v2589_v38 = vpop.f32.mrf.mxu1 }
 0x219   : > { %v932_v40 = vadd.f32 %v2589_v38, %v2557_v36  ;;  %v778_v42 = vpop.f32.mrf.mxu0 }
 0x21a   : > { %v923_v44 = vpop.f32.mrf.mxu1 }
 0x21b   : > { %989 = vst [vmem:[%s3210_s7 + $0x10] sm:$0xff] %v932_v40  ;;  %v924_v17 = vadd.f32 %v923_v44, %v778_v42  ;;  %v2558_v35 = vpop.f32.mrf.mxu0 }
 0x21c   : > { %v2590_v37 = vpop.f32.mrf.mxu1 }
 0x21d   : > { %987 = vst [vmem:[%s3210_s7] sm:$0xff] %v924_v17  ;;  %v935_v39 = vadd.f32 %v2590_v37, %v2558_v35  ;;  %v781_v41 = vpop.f32.mrf.mxu0 }
 0x21e   : > { %v926_v43 = vpop.f32.mrf.mxu1 }
 0x21f   : > { %990 = vst [vmem:[%s3210_s7 + $0x18] sm:$0xff] %v935_v39  ;;  %v927_v45 = vadd.f32 %v926_v43, %v781_v41  ;;  %v2561_v46 = vpop.f32.mrf.mxu0 }
 0x220   : > { %v2593_v47 = vpop.f32.mrf.mxu1 }
 0x221   : > { %988 = vst [vmem:[%s3210_s7 + $0x8] sm:$0xff] %v927_v45  ;;  %v948_v4 = vadd.f32 %v2593_v47, %v2561_v46  ;;  %v794_v5 = vpop.f32.mrf.mxu0 }
 0x222   : > { %v939_v8 = vpop.f32.mrf.mxu1 }
 0x223   : > { %993 = vst [vmem:[%s3210_s7 + $0x30] sm:$0xff] %v948_v4  ;;  %v940_v9 = vadd.f32 %v939_v8, %v794_v5  ;;  %v2562_v10 = vpop.f32.mrf.mxu0 }
 0x224   : > { %v2594_v11 = vpop.f32.mrf.mxu1 }
 0x225   : > { %991 = vst [vmem:[%s3210_s7 + $0x20] sm:$0xff] %v940_v9  ;;  %v951_v14 = vadd.f32 %v2594_v11, %v2562_v10  ;;  %v797_v15 = vpop.f32.mrf.mxu0 }
 0x226   : > { %v942_v18 = vpop.f32.mrf.mxu1 }
 0x227   : > { %994 = vst [vmem:[%s3210_s7 + $0x38] sm:$0xff] %v951_v14  ;;  %v943_v19 = vadd.f32 %v942_v18, %v797_v15  ;;  %v2565_v22 = vpop.f32.mrf.mxu0 }
 0x228   : > { %v2597_v23 = vpop.f32.mrf.mxu1 }
 0x229   : > { %992 = vst [vmem:[%s3210_s7 + $0x28] sm:$0xff] %v943_v19  ;;  %v964_v24 = vadd.f32 %v2597_v23, %v2565_v22  ;;  %v810_v25 = vpop.f32.mrf.mxu0 }
 0x22a   : > { %v955_v28 = vpop.f32.mrf.mxu1 }
 0x22b   : > { %997 = vst [vmem:[%s3210_s7 + $0x50] sm:$0xff] %v964_v24  ;;  %v956_v29 = vadd.f32 %v955_v28, %v810_v25  ;;  %v2566_v30 = vpop.f32.mrf.mxu0 }
 0x22c   : > { %v2598_v31 = vpop.f32.mrf.mxu1 }
 0x22d   : > { %995 = vst [vmem:[%s3210_s7 + $0x40] sm:$0xff] %v956_v29  ;;  %v967_v48 = vadd.f32 %v2598_v31, %v2566_v30  ;;  %v813_v49 = vpop.f32.mrf.mxu0 }
 0x22e   : > { %v958_v50 = vpop.f32.mrf.mxu1 }
 0x22f   : > { %998 = vst [vmem:[%s3210_s7 + $0x58] sm:$0xff] %v967_v48  ;;  %v959_v51 = vadd.f32 %v958_v50, %v813_v49  ;;  %v2569_v54 = vpop.f32.mrf.mxu0 }
 0x230   : > { %v2601_v55 = vpop.f32.mrf.mxu1 }
 0x231   : > { %996 = vst [vmem:[%s3210_s7 + $0x48] sm:$0xff] %v959_v51  ;;  %v980_v56 = vadd.f32 %v2601_v55, %v2569_v54  ;;  %v826_v57 = vpop.f32.mrf.mxu0 }
 0x232   : > { %v971_v16 = vpop.f32.mrf.mxu1 }
 0x233   : > { %1001 = vst [vmem:[%s3210_s7 + $0x70] sm:$0xff] %v980_v56  ;;  %v972_v34 = vadd.f32 %v971_v16, %v826_v57  ;;  %v2570_v60 = vpop.f32.mrf.mxu0 }
 0x234   : > { %v2602_v61 = vpop.f32.mrf.mxu1 }
 0x235   : > { %999 = vst [vmem:[%s3210_s7 + $0x60] sm:$0xff] %v972_v34  ;;  %v983_v62 = vadd.f32 %v2602_v61, %v2570_v60  ;;  %v829_v63 = vpop.f32.mrf.mxu0 }
 0x236   : > { %v974_v2 = vpop.f32.mrf.mxu1 }
 0x237   : > { %1002 = vst [vmem:[%s3210_s7 + $0x78] sm:$0xff] %v983_v62  ;;  %v975_v3 = vadd.f32 %v974_v2, %v829_v63 }
 0x239   : > { %1000 = vst [vmem:[%s3210_s7 + $0x68] sm:$0xff] %v975_v3 }
 0x23a PF: > { %v2828_v36 = vld [vmem:[%s3007_s10 + $0x78] sm:$0xff]   ;;  %v1141_v38 = vpack.c.bf16 %v3162_v58, %v3158_v52  ;;  %v2830_v42 = vld [vmem:[%s3007_s10 + $0x70] sm:$0xff]   ;;  %v2832_v17 = vld [vmem:[%s3007_s10 + $0x68] sm:$0xff]   ;;  %s3242_s22 = scalar_lea.vmem [#allocation3], %s2988_s23  ;;  %s1020_s15 = sadd.s32 %s2988_s23, %s3826_s14  ;;  %v1142_v24 = vpack.c.bf16 %v3170_v6, %v3166_v0  ;;  %v1143_v29 = vpack.c.bf16 %v3178_v20, %v3174_v12  ;;  %v1144_v62 = vpack.c.bf16 %v3186_v32, %v3182_v26 }
 0x23b   : > { %v2829_v40 = vld [vmem:[%s3007_s10 + $0x38] sm:$0xff]   ;;  %2603 = vmatprep.subr.bf16.mxu0 %v2828_v36  ;;  %v2831_v44 = vld [vmem:[%s3007_s10 + $0x30] sm:$0xff]   ;;  %v2833_v35 = vld [vmem:[%s3007_s10 + $0x28] sm:$0xff]   ;;  %s1021_s29 = sshra.s32 %s1020_s15, 3  ;;  %s1057_s5 = sshra.s32 %s3818_s27, 3 }
 0x23c   : > { %2651 = vmatprep.mubr.bf16.mxu1 %v1141_v38  ;;  %2635 = vmatprep.subr.bf16.mxu1 %v2829_v40  ;;  %v2834_v37 = vld [vmem:[%s3007_s10 + $0x60] sm:$0xff]   ;;  %v2836_v41 = vld [vmem:[%s3007_s10 + $0x58] sm:$0xff]   ;;  %v2838_v45 = vld [vmem:[%s3007_s10 + $0x50] sm:$0xff]   ;;  %s2168_s14 = sshll.u32 %s1021_s29, 2  ;;  %s2169_s25 = sshll.u32 %s1057_s5, 2 }
 0x23d   : > { %2604 = vmatpush3.bf16.msra.mxu0 %v2828_v36  ;;  %2636 = vmatpush3.bf16.msra.mxu1 %v2829_v40  ;;  %v2835_v39 = vld [vmem:[%s3007_s10 + $0x20] sm:$0xff]   ;;  %v2837_v43 = vld [vmem:[%s3007_s10 + $0x18] sm:$0xff]   ;;  %v2839_v4 = vld [vmem:[%s3007_s10 + $0x10] sm:$0xff]   ;;  %s3282_s27 = scalar_lea.vmem [#allocation2], %s2168_s14  ;;  %s3293_s30 = scalar_lea.vmem [#allocation2], %s2169_s25 }
 0x23e   : > { %2605 = vmatprep.subr.bf16.mxu0 %v2830_v42  ;;  %2637 = vmatprep.subr.bf16.mxu1 %v2831_v44  ;;  %v2840_v8 = vld [vmem:[%s3007_s10 + $0x48] sm:$0xff]   ;;  %v2842_v10 = vld [vmem:[%s3007_s10 + $0x40] sm:$0xff]   ;;  %v2844_v18 = vld [vmem:[%s3007_s10 + $0xb8] sm:$0xff]   ;;  %s1841_s24 = sadd.s32 %s3025_s26, %s2988_s23  ;;  %s3653_s12 = scalar_lea.vmem (!%p2151_p2), %s3786_s4, %s2988_s23 }
 0x23f   : > { %v2841_v9 = vld [vmem:[%s3007_s10 + $0x8] sm:$0xff]   ;;  %v2843_v11 = vld [vmem:[%s3007_s10] sm:$0xff]   ;;  %v2845_v25 = vld [vmem:[%s3007_s10 + $0xb0] sm:$0xff]  }
 0x240   : > { %v3245_v46 = vld [vmem:[%s3242_s22] sm:$0xff]  ;;  %v3248_v47 = vld [vmem:[%s3242_s22 + $0x8] sm:$0xff]  ;;  %v3260_v14 = vld [vmem:[%s3242_s22 + $0x10] sm:$0xff] }
 0x241   : > { %2606 = vmatpush3.bf16.msra.mxu0 %v2830_v42  ;;  %2638 = vmatpush3.bf16.msra.mxu1 %v2831_v44  ;;  %v1165_v5 = vpack.c.bf16 %v3248_v47, %v3245_v46  ;;  %v3264_v15 = vld [vmem:[%s3242_s22 + $0x18] sm:$0xff]  ;;  %v3270_v22 = vld [vmem:[%s3242_s22 + $0x20] sm:$0xff]  ;;  %v3273_v23 = vld [vmem:[%s3242_s22 + $0x28] sm:$0xff]  ;;  %v1145_v44 = vpack.c.bf16 %v3164_v59, %v3160_v53 }
 0x242   : > { %2607 = vmatprep.subr.bf16.mxu0 %v2832_v17  ;;  %2639 = vmatprep.subr.bf16.mxu1 %v2833_v35  ;;  %v1166_v19 = vpack.c.bf16 %v3264_v15, %v3260_v14  ;;  %v1167_v28 = vpack.c.bf16 %v3273_v23, %v3270_v22  ;;  %v3285_v30 = vld [vmem:[%s3282_s27] sm:$0xff]   ;;  %v3288_v31 = vld [vmem:[%s3242_s22 + $0x30] sm:$0xff]  ;;  %v3291_v48 = vld [vmem:[%s3242_s22 + $0x38] sm:$0xff] }
 0x243   : > { %2619 = vmatprep.mubr.bf16.mxu0 %v1165_v5  ;;  %v2303_v49 = vld [vmem:[%s3293_s30] sm:$0xff]   ;;  %v2846_v50 = vld [vmem:[%s3007_s10 + $0xa8] sm:$0xff]   ;;  %v2272_v55 = vunpack.c.l.bf16 %v3285_v30  ;;  %v2273_v56 = vunpack.c.h.bf16 %v3285_v30  ;;  %v1168_v57 = vpack.c.bf16 %v3291_v48, %v3288_v31 }
 0x244   : > { %v3298_v51 = vld [vmem:[%s3282_s27 + $0x8] sm:$0xff]   ;;  %v1012_v16 = vld [vmem:[%s3242_s22 + $0x40] sm:$0xff]  ;;  %v2304_v60 = vunpack.c.l.bf16 %v2303_v49  ;;  %v2305_v61 = vunpack.c.h.bf16 %v2303_v49 }
 0x245   : > { %2608 = vmatpush3.bf16.msra.mxu0 %v2832_v17  ;;  %2640 = vmatpush3.bf16.msra.mxu1 %v2833_v35  ;;  %v2381_v54 = vld [vmem:[%s3293_s30 + $0x8] sm:$0xff]   ;;  %v2276_v63 = vunpack.c.l.bf16 %v3298_v51  ;;  %v2847_v3 = vld [vmem:[%s3007_s10 + $0xa0] sm:$0xff]   ;;  %v1093_v38 = vmul.f32 %v3158_v52, %v2272_v55  ;;  %v1094_v40 = vmul.f32 %v3162_v58, %v2273_v56  ;;  %v3327_v52 = vld [vmem:[%s3242_s22 + $0x50] sm:$0xff] }
 0x246   : > { %2609 = vmatprep.subr.bf16.mxu0 %v2834_v37  ;;  %2641 = vmatprep.subr.bf16.mxu1 %v2835_v39  ;;  %v3307_v34 = vld [vmem:[%s3242_s22 + $0x48] sm:$0xff]  ;;  %v2308_v2 = vunpack.c.l.bf16 %v2381_v54  ;;  %v2384_v42 = vld [vmem:[%s3293_s30 + $0x20] sm:$0xff]   ;;  %v1109_v17 = vmul.f32 %v2304_v60, %v3245_v46  ;;  %v1110_v35 = vmul.f32 %v2305_v61, %v3248_v47  ;;  %v3330_v58 = vld [vmem:[%s3242_s22 + $0x58] sm:$0xff] }
 0x247   : > { %v1169_v36 = vpack.c.bf16 %v3307_v34, %v1012_v16  ;;  %v2848_v46 = vld [vmem:[%s3007_s10 + $0x98] sm:$0xff]   ;;  %v3341_v47 = vld [vmem:[%s3293_s30 + $0x10] sm:$0xff]   ;;  %v3344_v5 = vld [vmem:[%s3282_s27 + $0x28] sm:$0xff]  }
 0x248   : > { %v2313_v60 = vunpack.c.h.bf16 %v3341_v47  ;;  %v3789_v61 = vunpack.c.l.bf16 %v3344_v5 }
 0x249   : > { %2610 = vmatpush3.bf16.msra.mxu0 %v2834_v37  ;;  %2642 = vmatpush3.bf16.msra.mxu1 %v2835_v39  ;;  %v2277_v37 = vunpack.c.h.bf16 %v3298_v51  ;;  %v2309_v39 = vunpack.c.h.bf16 %v2381_v54 }
 0x24a   : > { %2611 = vmatprep.subr.bf16.mxu0 %v2836_v41  ;;  %2643 = vmatprep.subr.bf16.mxu1 %v2837_v43 }
 0x24b   : > { %v1096_v49 = vmul.f32 %v3170_v6, %v2277_v37 }
 0x24d   : > { %2612 = vmatpush3.bf16.msra.mxu0 %v2836_v41  ;;  %2644 = vmatpush3.bf16.msra.mxu1 %v2837_v43  ;;  %v3333_v41 = vld [vmem:[%s3282_s27 + $0x20] sm:$0xff]   ;;  %v1095_v43 = vmul.f32 %v3166_v0, %v2276_v63  ;;  %v1147_v0 = vpack.c.bf16 %v3180_v21, %v3176_v13 }
 0x24e   : > { %2613 = vmatprep.subr.bf16.mxu0 %v2838_v45  ;;  %2645 = vmatprep.subr.bf16.mxu1 %v2839_v4 }
 0x251   : > { %2614 = vmatpush3.bf16.msra.mxu0 %v2838_v45  ;;  %2646 = vmatpush3.bf16.msra.mxu1 %v2839_v4  ;;  %v1111_v45 = vmul.f32 %v2308_v2, %v3260_v14  ;;  %v2320_v4 = vunpack.c.l.bf16 %v2384_v42  ;;  %v1170_v14 = vpack.c.bf16 %v3330_v58, %v3327_v52  ;;  %v2386_v2 = vld [vmem:[%s3293_s30 + $0x30] sm:$0xff]  }
 0x252   : > { %2615 = vmatprep.subr.bf16.mxu0 %v2840_v8  ;;  %2647 = vmatprep.subr.bf16.mxu1 %v2841_v9 }
 0x253   : > { %v3369_v54 = vadd.f32 %v1111_v45, %v1095_v43  ;;  %v1117_v6 = vmul.f32 %v2320_v4, %v1012_v16  ;;  %v2328_v43 = vunpack.c.l.bf16 %v2386_v2  ;;  %v1018_v45 = vld [vmem:[%s3242_s22 + $0x70] sm:$0xff] }
 0x255   : > { %2616 = vmatpush3.bf16.msra.mxu0 %v2840_v8  ;;  %2648 = vmatpush3.bf16.msra.mxu1 %v2841_v9  ;;  %v1146_v8 = vpack.c.bf16 %v3172_v7, %v3168_v1  ;;  %v1148_v9 = vpack.c.bf16 %v3188_v33, %v3184_v27 }
 0x256   : > { %2617 = vmatprep.subr.bf16.mxu0 %v2842_v10  ;;  %2649 = vmatprep.subr.bf16.mxu1 %v2843_v11 }
 0x259   : > { %2618 = vmatpush3.bf16.msra.mxu0 %v2842_v10  ;;  %2650 = vmatpush3.bf16.msra.mxu1 %v2843_v11  ;;  %v2321_v10 = vunpack.c.h.bf16 %v2384_v42  ;;  %v2385_v11 = vld [vmem:[%s3293_s30 + $0x28] sm:$0xff]   ;;  %v3382_v42 = vld [vmem:[%s3282_s27 + $0x30] sm:$0xff]  }
 0x25a   : > { %2667 = vmatprep.subr.bf16.mxu0 %v2844_v18  ;;  %2715 = vmatprep.subr.bf16.mxu1 %v2844_v18 }
 0x25c   : > { %2620 = vmatmul.mubr.bf16.vlgmr.msra.gmra.mxu0 %v1166_v19  ;;  %2652 = vmatmul.mubr.bf16.vlgmr.msra.gmra.mxu1 %v1142_v24  ;;  %v3357_v19 = vld [vmem:[%s3242_s22 + $0x68] sm:$0xff]  ;;  %v3788_v24 = vunpack.c.l.bf16 %v3333_v41 }
 0x25d   : > { %2668 = vmatpush3.bf16.msra.mxu0 %v2844_v18  ;;  %2723 = vmatpush3.bf16.msra.mxu1 %v2844_v18  ;;  %v1016_v18 = vld [vmem:[%s3242_s22 + $0x60] sm:$0xff] }
 0x25e   : > { %2669 = vmatprep.subr.bf16.mxu0 %v2845_v25  ;;  %2716 = vmatprep.subr.bf16.mxu1 %v2845_v25  ;;  %v1101_v16 = vmul.f32 %v3160_v53, %v3788_v24  ;;  %v2329_v53 = vunpack.c.h.bf16 %v2386_v2 }
 0x25f   : > { %2623 = vmatprep.mubr.bf16.mxu0 %v1167_v28  ;;  %2655 = vmatprep.mubr.bf16.mxu1 %v1143_v29  ;;  %v3361_v28 = vadd.f32 %v1109_v17, %v1093_v38  ;;  %v3363_v29 = vadd.f32 %v1110_v35, %v1094_v40  ;;  %v2324_v38 = vunpack.c.l.bf16 %v2385_v11  ;;  %v1171_v40 = vpack.c.bf16 %v3357_v19, %v1016_v18 }
 0x260   : > { %v2325_v17 = vunpack.c.h.bf16 %v2385_v11  ;;  %v2850_v11 = vld [vmem:[%s3007_s10 + $0x88] sm:$0xff]  }
 0x261   : > { %2670 = vmatpush3.bf16.msra.mxu0 %v2845_v25  ;;  %2724 = vmatpush3.bf16.msra.mxu1 %v2845_v25  ;;  %v3787_v25 = vunpack.c.h.bf16 %v3333_v41 }
 0x262   : > { %2671 = vmatprep.subr.bf16.mxu0 %v2846_v50  ;;  %2717 = vmatprep.subr.bf16.mxu1 %v2846_v50 }
 0x263   : > { %v1102_v35 = vmul.f32 %v3164_v59, %v3787_v25  ;;  %v3793_v59 = vunpack.c.l.bf16 %v3382_v42  ;;  %v1133_v25 = vadd.f32 %v1117_v6, %v1101_v16  ;;  %v1122_v6 = vmul.f32 %v2329_v53, %v3357_v19 }
 0x264   : > { %2624 = vmatmul.mubr.bf16.gmra.mxu0 %v1168_v57  ;;  %2656 = vmatmul.mubr.bf16.gmra.mxu1 %v1144_v62  ;;  %v2312_v57 = vunpack.c.l.bf16 %v3341_v47  ;;  %v2849_v62 = vld [vmem:[%s3007_s10 + $0x90] sm:$0xff]   ;;  %v1019_v47 = vld [vmem:[%s3242_s22 + $0x78] sm:$0xff] }
 0x265   : > { %2672 = vmatpush3.bf16.msra.mxu0 %v2846_v50  ;;  %2725 = vmatpush3.bf16.msra.mxu1 %v2846_v50  ;;  %v1112_v50 = vmul.f32 %v2309_v39, %v3264_v15  ;;  %v3794_v15 = vunpack.c.h.bf16 %v3344_v5  ;;  %v1172_v2 = vpack.c.bf16 %v1019_v47, %v1018_v45 }
 0x266   : > { %2673 = vmatprep.subr.bf16.mxu0 %v2847_v3  ;;  %2718 = vmatprep.subr.bf16.mxu1 %v2847_v3 }
 0x267   : > { %2627 = vmatprep.mubr.bf16.mxu0 %v1169_v36  ;;  %2659 = vmatprep.mubr.bf16.mxu1 %v1145_v44  ;;  %v3377_v36 = vld [vmem:[%s3282_s27 + $0x10] sm:$0xff]   ;;  %v3385_v44 = vld [vmem:[%s3293_s30 + $0x18] sm:$0xff]   ;;  %v3394_v39 = vadd.f32 %v1112_v50, %v1096_v49  ;;  %v1103_v49 = vmul.f32 %v3168_v1, %v3789_v61  ;;  %v1104_v50 = vmul.f32 %v3172_v7, %v3794_v15 }
 0x268   : > { %v2281_v4 = vunpack.c.h.bf16 %v3377_v36  ;;  %v1114_v1 = vmul.f32 %v2313_v60, %v3273_v23  ;;  %v1121_v61 = vmul.f32 %v2328_v43, %v1016_v18  ;;  %v1105_v23 = vmul.f32 %v3176_v13, %v3793_v59  ;;  %v3434_v18 = vld [vmem:[%s3282_s27 + $0x38] sm:$0xff]  }
 0x269   : > { %2674 = vmatpush3.bf16.msra.mxu0 %v2847_v3  ;;  %2726 = vmatpush3.bf16.msra.mxu1 %v2847_v3  ;;  %v1118_v3 = vmul.f32 %v2321_v10, %v3307_v34  ;;  %v2280_v34 = vunpack.c.l.bf16 %v3377_v36  ;;  %v1113_v10 = vmul.f32 %v2312_v57, %v3270_v22  ;;  %v1119_v22 = vmul.f32 %v2324_v38, %v3327_v52  ;;  %v2387_v57 = vld [vmem:[%s3293_s30 + $0x38] sm:$0xff]   ;;  %v2851_v38 = vld [vmem:[%s3007_s10 + $0x80] sm:$0xff]  }
 0x26a   : > { %2675 = vmatprep.subr.bf16.mxu0 %v2848_v46  ;;  %2719 = vmatprep.subr.bf16.mxu1 %v2848_v46  ;;  %v1098_v52 = vmul.f32 %v3178_v20, %v2281_v4  ;;  %v2332_v60 = vunpack.c.l.bf16 %v2387_v57  ;;  %v3791_v16 = vunpack.c.l.bf16 %v3434_v18 }
 0x26b   : > { %v1134_v24 = vadd.f32 %v1118_v3, %v1102_v35  ;;  %v1097_v7 = vmul.f32 %v3174_v12, %v2280_v34  ;;  %v1135_v20 = vadd.f32 %v1119_v22, %v1103_v49  ;;  %v3790_v35 = vunpack.c.h.bf16 %v3434_v18 }
 0x26c   : > { %2628 = vmatmul.mubr.bf16.gmra.mxu0 %v1170_v14  ;;  %2660 = vmatmul.mubr.bf16.gmra.mxu1 %v1146_v8  ;;  %v3792_v14 = vunpack.c.h.bf16 %v3382_v42  ;;  %v2316_v8 = vunpack.c.l.bf16 %v3385_v44 }
 0x26d   : > { %2676 = vmatpush3.bf16.msra.mxu0 %v2848_v46  ;;  %2727 = vmatpush3.bf16.msra.mxu1 %v2848_v46  ;;  %v1120_v46 = vmul.f32 %v2325_v17, %v3330_v58  ;;  %v3422_v58 = vld [vmem:[%s3282_s27 + $0x18] sm:$0xff]   ;;  %v1130_v17 = vadd.f32 %v1114_v1, %v1098_v52 }
 0x26e   : > { %2677 = vmatprep.subr.bf16.mxu0 %v2849_v62  ;;  %2720 = vmatprep.subr.bf16.mxu1 %v2849_v62  ;;  %v1106_v12 = vmul.f32 %v3180_v21, %v3792_v14  ;;  %v2284_v3 = vunpack.c.l.bf16 %v3422_v58  ;;  %v2285_v13 = vunpack.c.h.bf16 %v3422_v58  ;;  %v1129_v21 = vadd.f32 %v1113_v10, %v1097_v7 }
 0x26f   : > { %2631 = vmatprep.mubr.bf16.mxu0 %v1171_v40  ;;  %2663 = vmatprep.mubr.bf16.mxu1 %v1147_v0  ;;  %v2317_v0 = vunpack.c.h.bf16 %v3385_v44  ;;  %v2333_v40 = vunpack.c.h.bf16 %v2387_v57  ;;  %v1136_v19 = vadd.f32 %v1120_v46, %v1104_v50  ;;  %v1484_v44 = vpack.c.bf16 %v1134_v24, %v1133_v25 }
 0x270   : > { %v1481_v24 = vpack.c.bf16 %v3394_v39, %v3369_v54  ;;  %v1115_v25 = vmul.f32 %v2316_v8, %v3288_v31  ;;  %v1099_v53 = vmul.f32 %v3182_v26, %v2284_v3  ;;  %v1482_v54 = vpack.c.bf16 %v1130_v17, %v1129_v21 }
 0x271   : > { %2678 = vmatpush3.bf16.msra.mxu0 %v2849_v62  ;;  %2728 = vmatpush3.bf16.msra.mxu1 %v2849_v62  ;;  %v1480_v62 = vpack.c.bf16 %v3363_v29, %v3361_v28  ;;  %v1137_v28 = vadd.f32 %v1121_v61, %v1105_v23  ;;  %v1138_v29 = vadd.f32 %v1122_v6, %v1106_v12 }
 0x272   : > { %2679 = vmatprep.subr.bf16.mxu0 %v2850_v11  ;;  %2721 = vmatprep.subr.bf16.mxu1 %v2850_v11  ;;  %v1116_v43 = vmul.f32 %v2317_v0, %v3291_v48  ;;  %v1124_v10 = vmul.f32 %v2333_v40, %v1019_v47  ;;  %v1100_v61 = vmul.f32 %v3186_v32, %v2285_v13 }
 0x273   : > { %v1107_v31 = vmul.f32 %v3184_v27, %v3791_v16  ;;  %v1108_v48 = vmul.f32 %v3188_v33, %v3790_v35  ;;  %v1486_v39 = vpack.c.bf16 %v1138_v29, %v1137_v28 }
 0x274   : > { %2632 = vmatmul.mubr.bf16.gmra.mxu0 %v1172_v2  ;;  %2664 = vmatmul.mubr.bf16.gmra.mxu1 %v1148_v9  ;;  %v1123_v9 = vmul.f32 %v2332_v60, %v1018_v45  ;;  %v1131_v45 = vadd.f32 %v1115_v25, %v1099_v53  ;;  %v1132_v26 = vadd.f32 %v1116_v43, %v1100_v61 }
 0x275   : > { %2680 = vmatpush3.bf16.msra.mxu0 %v2850_v11  ;;  %2729 = vmatpush3.bf16.msra.mxu1 %v2850_v11  ;;  %v1485_v11 = vpack.c.bf16 %v1136_v19, %v1135_v20  ;;  %v1140_v32 = vadd.f32 %v1124_v10, %v1108_v48 }
 0x276   : > { %2681 = vmatprep.subr.bf16.mxu0 %v2851_v38  ;;  %2722 = vmatprep.subr.bf16.mxu1 %v2851_v38  ;;  %v1139_v47 = vadd.f32 %v1123_v9, %v1107_v31  ;;  %v1483_v8 = vpack.c.bf16 %v1132_v26, %v1131_v45 }
 0x277   : > { %2683 = vmatprep.mubr.bf16.mxu0 %v1480_v62  ;;  %2691 = vmatprep.mubr.bf16.mxu1 %v1484_v44 }
 0x278   : > { %v1487_v49 = vpack.c.bf16 %v1140_v32, %v1139_v47 }
 0x279   : > { %2682 = vmatpush3.bf16.msra.mxu0 %v2851_v38  ;;  %2730 = vmatpush3.bf16.msra.mxu1 %v2851_v38 }
 0x27c   : > { %2684 = vmatmul.mubr.bf16.vlgmr.msra.gmra.mxu0 %v1481_v24  ;;  %2692 = vmatmul.mubr.bf16.vlgmr.msra.gmra.mxu1 %v1485_v11 }
 0x27d   : > { %2687 = vmatprep.mubr.bf16.mxu0 %v1482_v54  ;;  %2695 = vmatprep.mubr.bf16.mxu1 %v1486_v39  ;;  %v3466_v39 = vld [vmem:[%s207_s28] ss:$0 sm:$0xff]  ;;  %s3490_s28 = sshra.s32 %s1841_s24, 3 }
 0x27e   : > { %s2243_s26 = sshll.u32 %s3490_s28, 2 }
 0x27f   : > { %s3522_s8 = scalar_lea.vmem [#allocation2], %s2243_s26 }
 0x284   : > { %2688 = vmatmul.mubr.bf16.gmra.mxu0 %v1483_v8  ;;  %2696 = vmatmul.mubr.bf16.gmra.mxu1 %v1487_v49 }
 0x31c   : > { %v2621_v50 = vpop.f32.mrf.mxu0  ;;  %v2653_v27 = vpop.f32.mrf.mxu1 }
 0x31d   : > { %v1426_v61 = vadd.f32 %v2653_v27, %v2621_v50 }
 0x31e   : > { %v1272_v22 = vpop.f32.mrf.mxu0  ;;  %v1417_v46 = vpop.f32.mrf.mxu1 }
 0x31f   : > { %v1418_v54 = vadd.f32 %v1417_v46, %v1272_v22 }
 0x320   : > { %v2622_v57 = vpop.f32.mrf.mxu0  ;;  %v2654_v33 = vpop.f32.mrf.mxu1 }
 0x321   : > { %v1429_v45 = vadd.f32 %v2654_v33, %v2622_v57 }
 0x322   : > { %v1275_v2 = vpop.f32.mrf.mxu0  ;;  %v1420_v1 = vpop.f32.mrf.mxu1 }
 0x323   : > { %v1421_v26 = vadd.f32 %v1420_v1, %v1275_v2 }
 0x324   : > { %v2625_v7 = vpop.f32.mrf.mxu0  ;;  %v2657_v52 = vpop.f32.mrf.mxu1 }
 0x325   : > { %v1442_v47 = vadd.f32 %v2657_v52, %v2625_v7 }
 0x326   : > { %v1288_v0 = vpop.f32.mrf.mxu0  ;;  %v1433_v6 = vpop.f32.mrf.mxu1 }
 0x327   : > { %v1434_v49 = vadd.f32 %v1433_v6, %v1288_v0 }
 0x328   : > { %v2626_v38 = vpop.f32.mrf.mxu0  ;;  %v2658_v23 = vpop.f32.mrf.mxu1 }
 0x329   : > { %v1445_v35 = vadd.f32 %v2658_v23, %v2626_v38 }
 0x32a   : > { %v1291_v12 = vpop.f32.mrf.mxu0  ;;  %v1436_v20 = vpop.f32.mrf.mxu1 }
 0x32b   : > { %v3468_v27 = vadd.f32 %v1436_v20, %v1291_v12 }
 0x32c   : > { %v2629_v60 = vpop.f32.mrf.mxu0  ;;  %v2661_v40 = vpop.f32.mrf.mxu1 }
 0x32d   : > { %v1458_v31 = vadd.f32 %v2661_v40, %v2629_v60 }
 0x32e   : > { %v1304_v62 = vpop.f32.mrf.mxu0  ;;  %v1449_v19 = vpop.f32.mrf.mxu1 }
 0x32f   : > { %v1450_v16 = vadd.f32 %v1449_v19, %v1304_v62 }
 0x330   : > { %v2630_v44 = vpop.f32.mrf.mxu0  ;;  %v2662_v21 = vpop.f32.mrf.mxu1 }
 0x331   : > { %v1461_v22 = vadd.f32 %v2662_v21, %v2630_v44 }
 0x332   : > { %v1307_v17 = vpop.f32.mrf.mxu0  ;;  %v1452_v28 = vpop.f32.mrf.mxu1 }
 0x333   : > { %v1453_v59 = vadd.f32 %v1452_v28, %v1307_v17 }
 0x334   : > { %v2633_v29 = vpop.f32.mrf.mxu0  ;;  %v2665_v24 = vpop.f32.mrf.mxu1 }
 0x335   : > { %v1474_v15 = vadd.f32 %v2665_v24, %v2633_v29 }
 0x336   : > { %v1320_v25 = vpop.f32.mrf.mxu0  ;;  %v1465_v43 = vpop.f32.mrf.mxu1 }
 0x337   : > { %v1466_v6 = vadd.f32 %v1465_v43, %v1320_v25 }
 0x338   : > { %v2634_v9 = vpop.f32.mrf.mxu0  ;;  %v2666_v10 = vpop.f32.mrf.mxu1 }
 0x339   : > { %v1477_v20 = vadd.f32 %v2666_v10, %v2634_v9 }
 0x33a   : > { %v1323_v53 = vpop.f32.mrf.mxu0  ;;  %v1468_v11 = vpop.f32.mrf.mxu1 }
 0x33b   : > { %v1469_v24 = vadd.f32 %v1468_v11, %v1323_v53 }
 0x33c   : > { %v2685_v48 = vpop.f32.mrf.mxu0  ;;  %v2693_v8 = vpop.f32.mrf.mxu1 }
 0x33d   : > { %v1652_v32 = vadd.f32 %v2685_v48, %v1426_v61  ;;  %v1660_v14 = vadd.f32 %v2693_v8, %v1458_v31 }
 0x33e   : > { %v1587_v50 = vpop.f32.mrf.mxu0  ;;  %v1619_v40 = vpop.f32.mrf.mxu1 }
 0x33f   : > { %v1675_v46 = vadd.f32 %v3466_v39, %v1652_v32  ;;  %v1650_v60 = vadd.f32 %v1587_v50, %v1418_v54  ;;  %v1683_v57 = vadd.f32 %v3466_v39, %v1660_v14  ;;  %v1658_v33 = vadd.f32 %v1619_v40, %v1450_v16 }
 0x340   : > { %v2686_v2 = vpop.f32.mrf.mxu0  ;;  %v2694_v52 = vpop.f32.mrf.mxu1 }
 0x341   : > { %v1673_v1 = vadd.f32 %v3466_v39, %v1650_v60  ;;  %v1653_v7 = vadd.f32 %v2686_v2, %v1429_v45  ;;  %vm1691_vm0 = vcmp.gt.f32.partialorder %v1675_v46, 0.0  ;;  %v1707_v0 = vmul.f32 0.2, %v1675_v46 }
 0x342   : > { %v1661_v38 = vadd.f32 %v2694_v52, %v1461_v22  ;;  %v1590_v23 = vpop.f32.mrf.mxu0  ;;  %vm1699_vm1 = vcmp.gt.f32.partialorder %v1683_v57, 0.0  ;;  %v1715_v12 = vmul.f32 0.2, %v1683_v57  ;;  %v1622_v14 = vpop.f32.mrf.mxu1  ;;  %v1681_v21 = vadd.f32 %v3466_v39, %v1658_v33 }
 0x343   : > { %v1676_v62 = vadd.f32 %v3466_v39, %v1653_v7  ;;  %v1651_v19 = vadd.f32 %v1590_v23, %v1421_v26  ;;  %v3474_v16 = vsel %vm1691_vm0, %v1675_v46, %v1707_v0  ;;  %v1705_v44 = vmul.f32 0.2, %v1673_v1 }
 0x344   : > { %v1659_v17 = vadd.f32 %v1622_v14, %v1453_v59  ;;  %v2689_v28 = vpop.f32.mrf.mxu0  ;;  %v3479_v29 = vsel %vm1699_vm1, %v1683_v57, %v1715_v12  ;;  %v1684_v25 = vadd.f32 %v3466_v39, %v1661_v38  ;;  %v2697_v61 = vpop.f32.mrf.mxu1  ;;  %v1739_v59 = vmul.f32 %v3474_v16, %v3474_v16 }
 0x345   : > { %v1656_v43 = vadd.f32 %v2689_v28, %v1442_v47  ;;  %v1747_v9 = vmul.f32 %v3479_v29, %v3479_v29  ;;  %v3485_v10 = vadd.f32 %v3466_v39, %v1651_v19  ;;  %v1664_v31 = vadd.f32 %v2697_v61, %v1474_v15 }
 0x346   : > { %v1682_v54 = vadd.f32 %v3466_v39, %v1659_v17  ;;  %v1603_v48 = vpop.f32.mrf.mxu0  ;;  %v1708_v53 = vmul.f32 0.2, %v1676_v62  ;;  %v1635_v45 = vpop.f32.mrf.mxu1  ;;  %vm1689_vm2 = vcmp.gt.f32.partialorder %v1673_v1, 0.0  ;;  %v1713_v47 = vmul.f32 0.2, %v1681_v21  ;;  %1757 = vadd.xlane.f32.xlu1 %v1739_v59 }
 0x347   : > { %v3493_v11 = vadd.f32 %v3466_v39, %v1656_v43  ;;  %1773 = vadd.xlane.f32.xlu0 %v1747_v9  ;;  %v1654_v26 = vadd.f32 %v1603_v48, %v1434_v49  ;;  %v3496_v32 = vadd.f32 %v3466_v39, %v1664_v31  ;;  %v1662_v15 = vadd.f32 %v1635_v45, %v1466_v6 }
 0x348   : > { %v2690_v8 = vpop.f32.mrf.mxu0  ;;  %v3498_v50 = vsel %vm1689_vm2, %v1673_v1, %v1705_v44  ;;  %v1716_v22 = vmul.f32 0.2, %v1684_v25  ;;  %v2698_v40 = vpop.f32.mrf.mxu1  ;;  %v1706_v49 = vmul.f32 0.2, %v3485_v10  ;;  %v1714_v33 = vmul.f32 0.2, %v1682_v54 }
 0x349   : > { %v1677_v46 = vadd.f32 %v3466_v39, %v1654_v26  ;;  %v1657_v60 = vadd.f32 %v2690_v8, %v1445_v35  ;;  %v1737_v57 = vmul.f32 %v3498_v50, %v3498_v50  ;;  %v1685_v2 = vadd.f32 %v3466_v39, %v1662_v15 }
 0x34a   : > { %vm1692_vm3 = vcmp.gt.f32.partialorder %v1676_v62, 0.0  ;;  %v1606_v7 = vpop.f32.mrf.mxu0  ;;  %v1711_v52 = vmul.f32 0.2, %v3493_v11  ;;  %v1638_v0 = vpop.f32.mrf.mxu1  ;;  %v3512_v38 = vmul.f32 0.2, %v3496_v32  ;;  %v1665_v23 = vadd.f32 %v2698_v40, %v1477_v20 }
 0x34b   : > { %v1680_v1 = vadd.f32 %v3466_v39, %v1657_v60  ;;  %1753 = vadd.xlane.f32.xlu0 %v1737_v57  ;;  %v3508_v6 = vsel %vm1692_vm3, %v1676_v62, %v1708_v53  ;;  %v1655_v35 = vadd.f32 %v1606_v7, %v3468_v27  ;;  %v1663_v12 = vadd.f32 %v1638_v0, %v1469_v24 }
 0x34c   : > { %v1740_v19 = vmul.f32 %v3508_v6, %v3508_v6  ;;  %v1709_v14 = vmul.f32 0.2, %v1677_v46  ;;  %v2342_v44 = vpack.c.bf16 %v3508_v6, %v3474_v16  ;;  %vm1697_vm4 = vcmp.gt.f32.partialorder %v1681_v21, 0.0 }
 0x34d   : > { %v1678_v17 = vadd.f32 %v3466_v39, %v1655_v35  ;;  %v1717_v28 = vmul.f32 0.2, %v1685_v2  ;;  %v1686_v62 = vadd.f32 %v3466_v39, %v1663_v12  ;;  %v3520_v27 = vsel %vm1697_vm4, %v1681_v21, %v1713_v47 }
 0x34e   : > { %1759 = vadd.xlane.f32.xlu1 %v1740_v19  ;;  %vm1700_vm5 = vcmp.gt.f32.partialorder %v1684_v25, 0.0  ;;  %v1712_v43 = vmul.f32 0.2, %v1680_v1  ;;  %2388 = vst [vmem:[%s3522_s8 + $0x8] sm:$0xff] %v2342_v44   ;;  %v1745_v20 = vmul.f32 %v3520_v27, %v3520_v27  ;;  %vm1698_vm6 = vcmp.gt.f32.partialorder %v1682_v54, 0.0 }
 0x34f   : > { %v3527_v24 = vsel %vm1700_vm5, %v1684_v25, %v1716_v22  ;;  %v1688_v61 = vadd.f32 %v3466_v39, %v1665_v23  ;;  %v3534_v31 = vsel %vm1698_vm6, %v1682_v54, %v1714_v33  ;;  %v1710_v59 = vmul.f32 0.2, %v1678_v17 }
 0x350   : > { %v1748_v21 = vmul.f32 %v3527_v24, %v3527_v24  ;;  %v2362_v9 = vpack.c.bf16 %v3527_v24, %v3479_v29  ;;  %1769 = vadd.xlane.f32.xlu0 %v1745_v20  ;;  %v2357_v48 = vpack.c.bf16 %v3534_v31, %v3520_v27  ;;  %vm1690_vm7 = vcmp.gt.f32.partialorder %v3485_v10, 0.0 }
 0x351   : > { %vm1695_vm8 = vcmp.gt.f32.partialorder %v3493_v11, 0.0  ;;  %v1718_v25 = vmul.f32 0.2, %v1686_v62  ;;  %v3542_v39 = vsel %vm1690_vm7, %v3485_v10, %v1706_v49  ;;  %vm1696_vm9 = vcmp.gt.f32.partialorder %v1680_v1, 0.0 }
 0x352   : > { %2392 = vst [vmem:[%s3522_s8 + $0x28] sm:$0xff] %v2362_v9   ;;  %1775 = vadd.xlane.f32.xlu1 %v1748_v21  ;;  %vm1693_vm10 = vcmp.gt.f32.partialorder %v1677_v46, 0.0  ;;  %2391 = vst [vmem:[%s3522_s8 + $0x20] sm:$0xff] %v2357_v48   ;;  %v1738_v54 = vmul.f32 %v3542_v39, %v3542_v39  ;;  %v2337_v53 = vpack.c.bf16 %v3542_v39, %v3498_v50  ;;  %v1720_v47 = vmul.f32 0.2, %v1688_v61 }
 0x353   : > { %v3550_v45 = vsel %vm1695_vm8, %v3493_v11, %v1711_v52  ;;  %v3552_v26 = vsel %vm1696_vm9, %v1680_v1, %v1712_v43  ;;  %v1746_v10 = vmul.f32 %v3534_v31, %v3534_v31  ;;  %vm1694_vm11 = vcmp.gt.f32.partialorder %v1678_v17, 0.0 }
 0x354   : > { %v2352_v15 = vpack.c.bf16 %v3552_v26, %v3550_v45  ;;  %2338 = vst [vmem:[%s3522_s8] sm:$0xff] %v2337_v53   ;;  %1755 = vadd.xlane.f32.xlu0 %v1738_v54  ;;  %v3559_v8 = vsel %vm1693_vm10, %v1677_v46, %v1709_v14  ;;  %v3561_v22 = vsel %vm1694_vm11, %v1678_v17, %v1710_v59  ;;  %vm1701_vm12 = vcmp.gt.f32.partialorder %v1685_v2, 0.0 }
 0x355   : > { %vm1702_vm13 = vcmp.gt.f32.partialorder %v1686_v62, 0.0  ;;  %v2347_v11 = vpack.c.bf16 %v3561_v22, %v3559_v8  ;;  %v3566_v60 = vsel %vm1701_vm12, %v1685_v2, %v1717_v28  ;;  %v1743_v57 = vmul.f32 %v3550_v45, %v3550_v45 }
 0x356   : > { %1771 = vadd.xlane.f32.xlu1 %v1746_v10  ;;  %2390 = vst [vmem:[%s3522_s8 + $0x18] sm:$0xff] %v2352_v15   ;;  %v3568_v40 = vsel %vm1702_vm13, %v1686_v62, %v1718_v25  ;;  %vm1703_vm14 = vcmp.gt.f32.partialorder %v3496_v32, 0.0  ;;  %v1744_v49 = vmul.f32 %v3552_v26, %v3552_v26  ;;  %vm1704_vm15 = vcmp.gt.f32.partialorder %v1688_v61, 0.0 }
 0x357   : > { %v2367_v46 = vpack.c.bf16 %v3568_v40, %v3566_v60  ;;  %2389 = vst [vmem:[%s3522_s8 + $0x10] sm:$0xff] %v2347_v11   ;;  %v3581_v33 = vsel %vm1703_vm14, %v3496_v32, %v3512_v38  ;;  %v3583_v2 = vsel %vm1704_vm15, %v1688_v61, %v1720_v47  ;;  %v1741_v52 = vmul.f32 %v3559_v8, %v3559_v8 }
 0x358   : > { %1765 = vadd.xlane.f32.xlu0 %v1743_v57  ;;  %v2372_v7 = vpack.c.bf16 %v3583_v2, %v3581_v33  ;;  %v1742_v1 = vmul.f32 %v3561_v22, %v3561_v22  ;;  %v1749_v0 = vmul.f32 %v3566_v60, %v3566_v60  ;;  %v1750_v32 = vmul.f32 %v3568_v40, %v3568_v40 }
 0x359   : > { %2393 = vst [vmem:[%s3522_s8 + $0x30] sm:$0xff] %v2367_v46   ;;  %v1751_v35 = vmul.f32 %v3581_v33, %v3581_v33  ;;  %v1752_v38 = vmul.f32 %v3583_v2, %v3583_v2 }
 0x35a   : > { %1767 = vadd.xlane.f32.xlu1 %v1744_v49  ;;  %2394 = vst [vmem:[%s3522_s8 + $0x38] sm:$0xff] %v2372_v7  }
 0x35c   : > { %1761 = vadd.xlane.f32.xlu0 %v1741_v52 }
 0x35e   : > { %1763 = vadd.xlane.f32.xlu1 %v1742_v1 }
 0x360   : > { %1777 = vadd.xlane.f32.xlu0 %v1749_v0 }
 0x362   : > { %1779 = vadd.xlane.f32.xlu1 %v1750_v32 }
 0x364   : > { %1781 = vadd.xlane.f32.xlu0 %v1751_v35 }
 0x366   : > { %1783 = vadd.xlane.f32.xlu1 %v1752_v38 }
 0x3cf   : > { %v1758_v19 = vpop.xlane.xlu1 %1757 }
 0x3d0   : > { %v1774_v23 = vpop.xlane.xlu0 %1773  ;;  %v1787_v14 = vmax.f32 %v1758_v19, 1e-24 }
 0x3d1   : > { %v1795_v12 = vmax.f32 %v1774_v23, 1e-24 }
 0x3d3   : > { %2852 = vrsqrt.f32 %v1795_v12 }
 0x3d4   : > { %2854 = vrsqrt.f32 %v1787_v14  ;;  %v1754_v44 = vpop.xlane.xlu0 %1753 }
 0x3d5   : > { %v1785_v17 = vmax.f32 %v1754_v44, 1e-24 }
 0x3d7   : > { %2856 = vrsqrt.f32 %v1785_v17  ;;  %v1760_v28 = vpop.xlane.xlu1 %1759 }
 0x3d8   : > { %v1788_v62 = vmax.f32 %v1760_v28, 1e-24 }
 0x3d9   : > { %v1770_v43 = vpop.xlane.xlu0 %1769 }
 0x3da   : > { %2858 = vrsqrt.f32 %v1788_v62  ;;  %v1793_v20 = vmax.f32 %v1770_v43, 1e-24 }
 0x3db   : > { %v1776_v61 = vpop.xlane.xlu1 %1775 }
 0x3dc   : > { %v1796_v21 = vmax.f32 %v1776_v61, 1e-24  ;;  %2860 = vrsqrt.f32 %v1793_v20 }
 0x3dd   : > { %v1756_v9 = vpop.xlane.xlu0 %1755 }
 0x3de   : > { %2862 = vrsqrt.f32 %v1796_v21  ;;  %v1786_v48 = vmax.f32 %v1756_v9, 1e-24 }
 0x3df   : > { %v1772_v59 = vpop.xlane.xlu1 %1771 }
 0x3e0   : > { %v2853_v25 = vpop.eup %2852  ;;  %v1794_v54 = vmax.f32 %v1772_v59, 1e-24  ;;  %2864 = vrsqrt.f32 %v1786_v48 }
 0x3e1   : > { %v2855_v53 = vpop.eup %2854  ;;  %v3601_v47 = vmul.f32 %v2853_v25, %v3479_v29  ;;  %v1766_v15 = vpop.xlane.xlu0 %1765 }
 0x3e2   : > { %v3604_v10 = vmul.f32 %v2855_v53, %v3474_v16  ;;  %2866 = vrsqrt.f32 %v1794_v54  ;;  %v1791_v11 = vmax.f32 %v1766_v15, 1e-24 }
 0x3e3   : > { %v1768_v57 = vpop.xlane.xlu1 %1767 }
 0x3e4   : > { %v2857_v46 = vpop.eup %2856  ;;  %v1792_v49 = vmax.f32 %v1768_v57, 1e-24  ;;  %2868 = vrsqrt.f32 %v1791_v11 }
 0x3e5   : > { %v3607_v7 = vmul.f32 %v2857_v46, %v3498_v50  ;;  %v1762_v52 = vpop.xlane.xlu0 %1761 }
 0x3e6   : > { %2870 = vrsqrt.f32 %v1792_v49  ;;  %v1789_v0 = vmax.f32 %v1762_v52, 1e-24 }
 0x3e7   : > { %v2859_v1 = vpop.eup %2858  ;;  %v1764_v29 = vpop.xlane.xlu1 %1763 }
 0x3e8   : > { %v3610_v32 = vmul.f32 %v2859_v1, %v3508_v6  ;;  %v1790_v16 = vmax.f32 %v1764_v29, 1e-24  ;;  %2872 = vrsqrt.f32 %v1789_v0 }
 0x3e9   : > { %v2861_v35 = vpop.eup %2860  ;;  %v1778_v38 = vpop.xlane.xlu0 %1777 }
 0x3ea   : > { %2874 = vrsqrt.f32 %v1790_v16  ;;  %v3613_v12 = vmul.f32 %v2861_v35, %v3520_v27  ;;  %v1797_v50 = vmax.f32 %v1778_v38, 1e-24 }
 0x3eb   : > { %v2863_v23 = vpop.eup %2862  ;;  %v1780_v19 = vpop.xlane.xlu1 %1779 }
 0x3ec   : > { %v3616_v14 = vmul.f32 %v2863_v23, %v3527_v24  ;;  %v1798_v44 = vmax.f32 %v1780_v19, 1e-24  ;;  %2876 = vrsqrt.f32 %v1797_v50 }
 0x3ed   : > { %v2865_v17 = vpop.eup %2864  ;;  %v1782_v6 = vpop.xlane.xlu0 %1781 }
 0x3ee   : > { %2878 = vrsqrt.f32 %v1798_v44  ;;  %v3619_v62 = vmul.f32 %v2865_v17, %v3542_v39  ;;  %v1799_v43 = vmax.f32 %v1782_v6, 1e-24 }
 0x3ef   : > { %v2867_v28 = vpop.eup %2866  ;;  %v1784_v20 = vpop.xlane.xlu1 %1783 }
 0x3f0   : > { %v3622_v61 = vmul.f32 %v2867_v28, %v3534_v31  ;;  %v1800_v27 = vmax.f32 %v1784_v20, 1e-24  ;;  %2880 = vrsqrt.f32 %v1799_v43 }
 0x3f1   : > { %v2869_v21 = vpop.eup %2868 }
 0x3f2   : > { %2882 = vrsqrt.f32 %v1800_v27  ;;  %v3625_v9 = vmul.f32 %v2869_v21, %v3550_v45 }
 0x3f3   : > { %v2871_v24 = vpop.eup %2870 }
 0x3f4   : > { %v3628_v59 = vmul.f32 %v2871_v24, %v3552_v26 }
 0x3f5   : > { %v2873_v48 = vpop.eup %2872 }
 0x3f6   : > { %v1821_v39 = vmul.f32 %v2873_v48, %v3559_v8 }
 0x3f7   : > { %v2875_v25 = vpop.eup %2874 }
 0x3f8   : > { %v1822_v54 = vmul.f32 %v2875_v25, %v3561_v22 }
 0x3f9   : > { %v2877_v53 = vpop.eup %2876 }
 0x3fa   : > { %v3633_v15 = vmul.f32 %v2877_v53, %v3566_v60 }
 0x3fb   : > { %v2879_v31 = vpop.eup %2878 }
 0x3fc   : > { %v3636_v11 = vmul.f32 %v2879_v31, %v3568_v40  ;;  %1920 = sbr.rel (%p2151_p2) target bundleno = 1036 (0x40c), region = 78 }
 0x3fd   : > { %v2881_v57 = vpop.eup %2880 }
 0x3fe   : > { %v3639_v46 = vmul.f32 %v2881_v57, %v3581_v33 }
 0x3ff   : > { %v2883_v45 = vpop.eup %2882 }
 0x400   : > { %v3642_v26 = vmul.f32 %v2883_v45, %v3583_v2 }
 0x401   : > { %v1921_v8 = vadd.f32 %v2272_v55, %v3607_v7  ;;  %v1922_v22 = vadd.f32 %v2273_v56, %v3619_v62  ;;  %v1923_v60 = vadd.f32 %v2276_v63, %v3604_v10  ;;  %v1924_v55 = vadd.f32 %v2277_v37, %v3610_v32 }
 0x402   : > { %v1925_v30 = vadd.f32 %v2280_v34, %v1821_v39  ;;  %v1926_v40 = vadd.f32 %v2281_v4, %v1822_v54  ;;  %v1927_v56 = vadd.f32 %v2284_v3, %v3625_v9  ;;  %v1928_v63 = vadd.f32 %v2285_v13, %v3628_v59 }
 0x403   : > { %1938 = vst [vmem:[%s3653_s12] sm:$0xff] %v1921_v8  ;;  %1939 = vst [vmem:[%s3653_s12 + $0x8] sm:$0xff] %v1922_v22  ;;  %v3795_v51 = vunpack.c.l.bf16 %v3333_v41  ;;  %v3796_v36 = vunpack.c.h.bf16 %v3333_v41  ;;  %v3797_v4 = vunpack.c.l.bf16 %v3344_v5  ;;  %v3798_v3 = vunpack.c.h.bf16 %v3344_v5 }
 0x404   : > { %1940 = vst [vmem:[%s3653_s12 + $0x10] sm:$0xff] %v1923_v60  ;;  %1941 = vst [vmem:[%s3653_s12 + $0x18] sm:$0xff] %v1924_v55  ;;  %v3799_v41 = vunpack.c.l.bf16 %v3382_v42  ;;  %v3800_v2 = vunpack.c.h.bf16 %v3382_v42  ;;  %v3801_v52 = vunpack.c.l.bf16 %v3434_v18  ;;  %v3802_v5 = vunpack.c.h.bf16 %v3434_v18 }
 0x405   : > { %v1929_v37 = vadd.f32 %v3795_v51, %v3613_v12  ;;  %v1930_v34 = vadd.f32 %v3796_v36, %v3622_v61  ;;  %v1931_v58 = vadd.f32 %v3797_v4, %v3601_v47  ;;  %v1932_v13 = vadd.f32 %v3798_v3, %v3616_v14  ;;  %1942 = vst [vmem:[%s3653_s12 + $0x20] sm:$0xff] %v1925_v30 }
 0x406   : > { %1943 = vst [vmem:[%s3653_s12 + $0x28] sm:$0xff] %v1926_v40  ;;  %1944 = vst [vmem:[%s3653_s12 + $0x30] sm:$0xff] %v1927_v56  ;;  %v1933_v33 = vadd.f32 %v3799_v41, %v3633_v15  ;;  %v1934_v49 = vadd.f32 %v3800_v2, %v3636_v11  ;;  %v1935_v1 = vadd.f32 %v3801_v52, %v3639_v46 }
 0x407   : > { %1945 = vst [vmem:[%s3653_s12 + $0x38] sm:$0xff] %v1928_v63  ;;  %v1936_v0 = vadd.f32 %v3802_v5, %v3642_v26  ;;  %1946 = vst [vmem:[%s3653_s12 + $0x40] sm:$0xff] %v1929_v37 }
 0x408   : > { %1947 = vst [vmem:[%s3653_s12 + $0x48] sm:$0xff] %v1930_v34  ;;  %1948 = vst [vmem:[%s3653_s12 + $0x50] sm:$0xff] %v1931_v58 }
 0x409   : > { %1949 = vst [vmem:[%s3653_s12 + $0x58] sm:$0xff] %v1932_v13  ;;  %1950 = vst [vmem:[%s3653_s12 + $0x60] sm:$0xff] %v1933_v33 }
 0x40a   : > { %1951 = vst [vmem:[%s3653_s12 + $0x68] sm:$0xff] %v1934_v49  ;;  %1952 = vst [vmem:[%s3653_s12 + $0x70] sm:$0xff] %v1935_v1 }
 0x40b   : > { %1953 = vst [vmem:[%s3653_s12 + $0x78] sm:$0xff] %v1936_v0 }
 0x40c PF: > { %p2245_p3 = scmp.le.s32.totalorder %s2912_s16, 0 }
 0x40d   : > { %s3719_s22 = scalar_lea.vmem (!%p2245_p3), %s3786_s4, %s2988_s23 }
 0x40e   : > { %1957 = sbr.rel (%p2245_p3) target bundleno = 1054 (0x41e), region = 82 }
 0x413   : > { %v1959_v42 = vld [vmem:[%s3719_s22] sm:$0xff]  ;;  %v1960_v18 = vld [vmem:[%s3719_s22 + $0x8] sm:$0xff]  ;;  %v1961_v29 = vld [vmem:[%s3719_s22 + $0x10] sm:$0xff] }
 0x414   : > { %v1975_v16 = vadd.f32 %v1959_v42, %v3607_v7  ;;  %v1976_v35 = vadd.f32 %v1960_v18, %v3619_v62  ;;  %v1977_v38 = vadd.f32 %v1961_v29, %v3604_v10  ;;  %v1962_v23 = vld [vmem:[%s3719_s22 + $0x18] sm:$0xff]  ;;  %v1963_v50 = vld [vmem:[%s3719_s22 + $0x20] sm:$0xff]  ;;  %v1964_v19 = vld [vmem:[%s3719_s22 + $0x28] sm:$0xff] }
 0x415   : > { %v1978_v44 = vadd.f32 %v1962_v23, %v3610_v32  ;;  %v1979_v17 = vadd.f32 %v1963_v50, %v1821_v39  ;;  %v1980_v6 = vadd.f32 %v1964_v19, %v1822_v54  ;;  %v1965_v28 = vld [vmem:[%s3719_s22 + $0x30] sm:$0xff]  ;;  %v1966_v43 = vld [vmem:[%s3719_s22 + $0x38] sm:$0xff]  ;;  %v1967_v7 = vld [vmem:[%s3719_s22 + $0x40] sm:$0xff] }
 0x416   : > { %1991 = vst [vmem:[%s3719_s22] sm:$0xff] %v1975_v16  ;;  %1992 = vst [vmem:[%s3719_s22 + $0x8] sm:$0xff] %v1976_v35  ;;  %v1981_v10 = vadd.f32 %v1965_v28, %v3625_v9  ;;  %v1982_v62 = vadd.f32 %v1966_v43, %v3628_v59  ;;  %v1983_v32 = vadd.f32 %v1967_v7, %v3613_v12  ;;  %v1968_v20 = vld [vmem:[%s3719_s22 + $0x48] sm:$0xff]  ;;  %v1969_v27 = vld [vmem:[%s3719_s22 + $0x50] sm:$0xff] }
 0x417   : > { %1993 = vst [vmem:[%s3719_s22 + $0x10] sm:$0xff] %v1977_v38  ;;  %v1970_v21 = vld [vmem:[%s3719_s22 + $0x58] sm:$0xff]  ;;  %1994 = vst [vmem:[%s3719_s22 + $0x18] sm:$0xff] %v1978_v44  ;;  %v1984_v24 = vadd.f32 %v1968_v20, %v3622_v61  ;;  %v1985_v9 = vadd.f32 %v1969_v27, %v3601_v47  ;;  %v1971_v48 = vld [vmem:[%s3719_s22 + $0x60] sm:$0xff] }
 0x418   : > { %1995 = vst [vmem:[%s3719_s22 + $0x20] sm:$0xff] %v1979_v17  ;;  %1996 = vst [vmem:[%s3719_s22 + $0x28] sm:$0xff] %v1980_v6  ;;  %v1986_v59 = vadd.f32 %v1970_v21, %v3616_v14  ;;  %v1972_v12 = vld [vmem:[%s3719_s22 + $0x68] sm:$0xff]  ;;  %v1973_v25 = vld [vmem:[%s3719_s22 + $0x70] sm:$0xff]  ;;  %v1987_v39 = vadd.f32 %v1971_v48, %v3633_v15 }
 0x419   : > { %1997 = vst [vmem:[%s3719_s22 + $0x30] sm:$0xff] %v1981_v10  ;;  %1998 = vst [vmem:[%s3719_s22 + $0x38] sm:$0xff] %v1982_v62  ;;  %v1988_v54 = vadd.f32 %v1972_v12, %v3636_v11  ;;  %v1989_v61 = vadd.f32 %v1973_v25, %v3639_v46  ;;  %v1974_v53 = vld [vmem:[%s3719_s22 + $0x78] sm:$0xff] }
 0x41a   : > { %1999 = vst [vmem:[%s3719_s22 + $0x40] sm:$0xff] %v1983_v32  ;;  %2000 = vst [vmem:[%s3719_s22 + $0x48] sm:$0xff] %v1984_v24  ;;  %v1990_v47 = vadd.f32 %v1974_v53, %v3642_v26 }
 0x41b   : > { %2001 = vst [vmem:[%s3719_s22 + $0x50] sm:$0xff] %v1985_v9  ;;  %2002 = vst [vmem:[%s3719_s22 + $0x58] sm:$0xff] %v1986_v59 }
 0x41c   : > { %2003 = vst [vmem:[%s3719_s22 + $0x60] sm:$0xff] %v1987_v39  ;;  %2004 = vst [vmem:[%s3719_s22 + $0x68] sm:$0xff] %v1988_v54 }
 0x41d   : > { %2005 = vst [vmem:[%s3719_s22 + $0x70] sm:$0xff] %v1989_v61  ;;  %2006 = vst [vmem:[%s3719_s22 + $0x78] sm:$0xff] %v1990_v47 }
 0x41e PF: > { %s14_s19 = sadd.s32 1, %s2924_s19   ;;  %s3803_s15 = smov %s2916_s17 }
 0x41f   : > { %p11_p4 = scmp.ge.s32.totalorder %s14_s19, 8   ;;  %s3804_s16 = smov %s2920_s18 }
 0x420   : > { %s3805_s17 = smov %s3808_s20  ;;  %s3806_s18 = smov %s3812_s21 }
 0x421   :  { %13 = sbr.rel (!%p11_p4) target bundleno = 3 (0x3), region = 132 }
 0x426   :  { %2018 = vsyncmov [#allocation4] }
 0x429   :  { %s2019_s23 = vpop.sfrf %2018 }
 0x42a   :  { %p2248_p5 = scmp.ne.s32.totalorder %s2019_s23, 0 }
 0x42c   :  { %2023 = shalt.err (%p2248_p5)  }

</bundles_post_ra>
